<compile_context>
chip_gen: v5e
topology: v5e:2x2
jax: 0.10.0
libtpu: 0.0.40
codegen_flags: <defaults>
</compile_context>

<pallas_src>
import jax
import jax.numpy as jnp
from jax.experimental import pallas as pl
from jax.experimental.pallas import tpu as pltpu

# ---------------------------------------------------------------------------
# Model hyper-parameters (small, consistent with the module's __init__)
# ---------------------------------------------------------------------------
NUM_NODES = 8
NUM_FEATURES = 16
HIDDEN_DIM = 32                        # per-head hidden size
NUM_HEADS = 4
NUM_CLASSES = 2
NUM_EDGES = 16
NUM_REL = 3
NUM_CH = NUM_REL * NUM_HEADS           # 12 (relation, head) channels
FC1_DIM = HIDDEN_DIM // 2              # 16
NEG_SLOPE = 0.2                        # PyG GATConv default negative_slope
NEG_INF = -1e30
OUT_PAD = 128                          # lane-dense padded logits width

# Column layout of the folded-attention channel (channel NUM_CH of w_proj).
SRC_COL = 0                            # alpha_src for channel c at column c
DST_COL = 16                           # alpha_dst for channel c at column 16+c

# Row layout of the packed MLP-head slab w_head [HEAD_ROWS, OUT_PAD].
ROW_W1 = 0                             # fc1 weight, rows 0..31, lanes 0..15
ROW_BC = 32                            # combine bias, lanes 0..31
ROW_B1 = 33                            # fc1 bias, lanes 0..15
ROW_W2 = 40                            # fc2 weight (padded), rows 40..55
ROW_B2 = 56                            # fc2 bias (padded)
HEAD_ROWS = 64


def _elu(x):
  # ELU(x) = x if x > 0 else exp(x) - 1   (alpha = 1.0)
  return jnp.where(x > 0, x, jnp.exp(jnp.minimum(x, 0.0)) - 1.0)


# ---------------------------------------------------------------------------
# Fused kernel.
#   x       : [N, F]
#   w_proj  : [13, F, D]  channels 0..11 = value projections W_r[:, h*D:(h+1)*D]
#                         channel 12     = folded attention (W @ a_src | W @ a_dst)
#   log_adj : [12, N, N]  log edge multiplicity (j -> i), -1e30 for non-edges
#   w_comb  : [12, D+1, D] rows 0..D-1 = combine weight slice, row D = GAT bias
#   w_head  : [64, 128]   fc1 / fc2 weights + remaining biases (see ROW_* above)
#   out     : [N, 128]    padded logits (slice [:, :NUM_CLASSES] outside)
# ---------------------------------------------------------------------------
def fused_gnn_kernel(x_ref, w_proj_ref, log_adj_ref, w_comb_ref, w_head_ref,
                     out_ref):
  n, f = x_ref.shape

  # --- one batched projection for everything --------------------------------
  x_b = jnp.broadcast_to(x_ref[...][None, :, :], (NUM_CH + 1, n, f))
  proj = jnp.einsum("cnf,cfd->cnd", x_b, w_proj_ref[...],
                    preferred_element_type=jnp.float32)          # [13, N, D]
  vals = proj[:NUM_CH]                                           # [12, N, D]
  alpha = proj[NUM_CH]                                           # [N, D]

  # --- batched attention logits + softmax over all 12 channels --------------
  alpha_t = alpha.T                                              # [D, N] (single transpose)
  src_t = alpha_t[SRC_COL:SRC_COL + NUM_CH]                      # [12, N]
  dst_t = alpha_t[DST_COL:DST_COL + NUM_CH]                      # [12, N]
  e = dst_t[:, :, None] + src_t[:, None, :]                      # [12, N(dst), N(src)]
  e = jnp.where(e > 0, e, NEG_SLOPE * e)                         # LeakyReLU(0.2)
  e = e + log_adj_ref[...]                                       # mask + multiplicity
  e = e - jnp.max(e, axis=-1, keepdims=True)
  p = jnp.exp(e)
  attn = p / jnp.sum(p, axis=-1, keepdims=True)                  # softmax over sources

  # --- aggregation, GAT bias, ELU (all 12 channels at once) -----------------
  agg = jnp.einsum("cij,cjd->cid", attn, vals,
                   preferred_element_type=jnp.float32)           # [12, N, D]
  w_comb = w_comb_ref[...]                                       # [12, D+1, D]
  gat_bias = w_comb[:, HIDDEN_DIM:HIDDEN_DIM + 1, :]             # [12, 1, D]
  h3 = _elu(agg + gat_bias)                                      # [12, N, D]

  # --- MLP head: combine -> ELU -> fc1 -> ELU -> fc2 -------------------------
  # TODO(synk): dropout between layers is a no-op in eval mode; omitted.
  head = w_head_ref[...]                                         # [64, 128]
  wc3 = w_comb[:, :HIDDEN_DIM, :]                                # [12, D, D]
  zc = jnp.einsum("cid,cdk->cik", h3, wc3,
                  preferred_element_type=jnp.float32)            # [12, N, D]
  z = jnp.sum(zc, axis=0) + head[ROW_BC:ROW_BC + 1, :HIDDEN_DIM]
  z = _elu(z)                                                    # [N, D]
  z = jnp.dot(z, head[ROW_W1:ROW_W1 + HIDDEN_DIM, :FC1_DIM],
              preferred_element_type=jnp.float32)
  z = _elu(z + head[ROW_B1:ROW_B1 + 1, :FC1_DIM])                # [N, 16]
  out_ref[...] = (jnp.dot(z, head[ROW_W2:ROW_W2 + FC1_DIM, :],
                          preferred_element_type=jnp.float32)
                  + head[ROW_B2:ROW_B2 + 1, :])                  # one lane-dense store


# ---------------------------------------------------------------------------
# pallas_call wrapper: 5 VMEM-resident operands, single grid-less program.
# ---------------------------------------------------------------------------
_VMEM = pl.BlockSpec(memory_space=pltpu.MemorySpace.VMEM)


def fused_forward(x, w_proj, log_adj, w_comb, w_head):
  out_pad = pl.pallas_call(
      fused_gnn_kernel,
      out_shape=jax.ShapeDtypeStruct((x.shape[0], OUT_PAD), jnp.float32),
      in_specs=[_VMEM] * 5,
      out_specs=_VMEM,
  )(x, w_proj, log_adj, w_comb, w_head)
  return out_pad[:, :NUM_CLASSES]


@jax.jit
def multi_relational_gnn_forward(packed_params, x, log_adj):
  return fused_forward(x, packed_params["w_proj"], log_adj,
                       packed_params["w_comb"], packed_params["w_head"])


# ---------------------------------------------------------------------------
# Host-side packing / adjacency construction / parameter init.
# ---------------------------------------------------------------------------
def pack_params(raw):
  # Projection slab: 12 value channels + 1 folded-attention channel.
  chans = []
  fold = jnp.zeros((NUM_FEATURES, HIDDEN_DIM), jnp.float32)
  for r in range(NUM_REL):
    for h in range(NUM_HEADS):
      c = r * NUM_HEADS + h
      w_ch = raw["w"][r][:, h * HIDDEN_DIM:(h + 1) * HIDDEN_DIM]      # [F, D]
      chans.append(w_ch)
      fold = fold.at[:, SRC_COL + c].set(w_ch @ raw["att_src"][r][h])
      fold = fold.at[:, DST_COL + c].set(w_ch @ raw["att_dst"][r][h])
  chans.append(fold)
  w_proj = jnp.stack(chans, axis=0)                                   # [13, F, D]

  # Combine slab: per-channel combine weight rows 0..D-1, GAT bias row D.
  w_comb = jnp.zeros((NUM_CH, HIDDEN_DIM + 1, HIDDEN_DIM), jnp.float32)
  for r in range(NUM_REL):
    for h in range(NUM_HEADS):
      c = r * NUM_HEADS + h
      w_comb = w_comb.at[c, :HIDDEN_DIM, :].set(
          raw["wc"][c * HIDDEN_DIM:(c + 1) * HIDDEN_DIM, :])
      w_comb = w_comb.at[c, HIDDEN_DIM, :].set(
          raw["gb"][r][h * HIDDEN_DIM:(h + 1) * HIDDEN_DIM])

  # Head slab: fc1 / fc2 weights + remaining biases, zero-padded to 128 lanes.
  w_head = jnp.zeros((HEAD_ROWS, OUT_PAD), jnp.float32)
  w_head = w_head.at[ROW_W1:ROW_W1 + HIDDEN_DIM, :FC1_DIM].set(raw["w1"])
  w_head = w_head.at[ROW_BC, :HIDDEN_DIM].set(raw["bc"])
  w_head = w_head.at[ROW_B1, :FC1_DIM].set(raw["b1"])
  w_head = w_head.at[ROW_W2:ROW_W2 + FC1_DIM, :NUM_CLASSES].set(raw["w2"])
  w_head = w_head.at[ROW_B2, :NUM_CLASSES].set(raw["b2"])

  return {"w_proj": w_proj, "w_comb": w_comb, "w_head": w_head}


def init_params(key):
  keys = iter(jax.random.split(key, 24))

  def glorot(shape):
    fan_in, fan_out = shape[0], shape[-1]
    std = (2.0 / (fan_in + fan_out)) ** 0.5
    return (std * jax.random.normal(next(keys), shape)).astype(jnp.float32)

  def small(shape):
    return (0.05 * jax.random.normal(next(keys), shape)).astype(jnp.float32)

  raw = {"w": [], "att_src": [], "att_dst": [], "gb": []}
  for _ in range(NUM_REL):
    raw["w"].append(glorot((NUM_FEATURES, NUM_HEADS * HIDDEN_DIM)))
    raw["att_src"].append(glorot((NUM_HEADS, HIDDEN_DIM)))
    raw["att_dst"].append(glorot((NUM_HEADS, HIDDEN_DIM)))
    raw["gb"].append(small((NUM_HEADS * HIDDEN_DIM,)))
  raw["wc"] = glorot((NUM_CH * HIDDEN_DIM, HIDDEN_DIM))
  raw["bc"] = small((HIDDEN_DIM,))
  raw["w1"] = glorot((HIDDEN_DIM, FC1_DIM))
  raw["b1"] = small((FC1_DIM,))
  raw["w2"] = glorot((FC1_DIM, NUM_CLASSES))
  raw["b2"] = small((NUM_CLASSES,))
  return raw, pack_params(raw)


def edge_index_to_counts(edge_index, num_nodes):
  """edge_index [2, E] (row 0 = source j, row 1 = target i) -> cnt[i, j].

  Self loops are removed and re-added exactly once, matching PyG GATConv's
  remove_self_loops + add_self_loops behaviour; duplicates keep multiplicity.
  """
  src, dst = edge_index[0], edge_index[1]
  cnt = jnp.zeros((num_nodes, num_nodes), jnp.float32).at[dst, src].add(1.0)
  diag = jnp.arange(num_nodes)
  return cnt.at[diag, diag].set(1.0)


def counts_to_log_adj(counts):
  """[R, N, N] counts -> [R*H, N, N] log-count adjacency (-1e30 for non-edges)."""
  log_c = jnp.where(counts > 0, jnp.log(jnp.maximum(counts, 1.0)), NEG_INF)
  return jnp.repeat(log_c, NUM_HEADS, axis=0)


# ---------------------------------------------------------------------------
# Pure-JAX reference (PyG GATConv eval-mode semantics) for a sanity check.
# ---------------------------------------------------------------------------
def reference_forward(raw, x, counts):
  hs = []
  for r in range(NUM_REL):
    wx = x @ raw["w"][r]                                          # [N, H*D]
    wxh = wx.reshape(NUM_NODES, NUM_HEADS, HIDDEN_DIM)
    a_src = jnp.einsum("nhd,hd->nh", wxh, raw["att_src"][r])
    a_dst = jnp.einsum("nhd,hd->nh", wxh, raw["att_dst"][r])
    cnt = counts[r]                                               # [N, N] (dst, src)
    outs = []
    for h in range(NUM_HEADS):
      e = a_dst[:, h][:, None] + a_src[:, h][None, :]
      e = jnp.where(e > 0, e, NEG_SLOPE * e)
      e = jnp.where(cnt > 0, e, NEG_INF)
      e = e - jnp.max(e, axis=1, keepdims=True)
      p = cnt * jnp.exp(e)                                        # edge multiplicity
      attn = p / jnp.sum(p, axis=1, keepdims=True)
      outs.append(attn @ wxh[:, h, :])
    h_rel = jnp.concatenate(outs, axis=1) + raw["gb"][r][None, :]
    hs.append(_elu(h_rel))
  hcat = jnp.concatenate(hs, axis=1)                              # [N, 3*H*D]
  z = _elu(hcat @ raw["wc"] + raw["bc"][None, :])
  z = _elu(z @ raw["w1"] + raw["b1"][None, :])
  return z @ raw["w2"] + raw["b2"][None, :]


# ---------------------------------------------------------------------------
if __name__ == "__main__":
  key = jax.random.PRNGKey(0)
  k_x, k_e1, k_e2, k_e3, k_p = jax.random.split(key, 5)

  x = jax.random.normal(k_x, (NUM_NODES, NUM_FEATURES), dtype=jnp.float32)

  def rand_edges(k):
    return jax.random.randint(k, (2, NUM_EDGES), 0, NUM_NODES, dtype=jnp.int32)

  counts = jnp.stack(
      [edge_index_to_counts(rand_edges(k), NUM_NODES)
       for k in (k_e1, k_e2, k_e3)], axis=0)                      # [3, N, N]
  log_adj = counts_to_log_adj(counts)                             # [12, N, N]

  raw, packed = init_params(k_p)

  out = multi_relational_gnn_forward(packed, x, log_adj)
  jax.block_until_ready(out)
  assert out.shape == (NUM_NODES, NUM_CLASSES)

  ref = reference_forward(raw, x, counts)
  max_err = float(jnp.max(jnp.abs(out - ref)))
  # Loose bound: both sides may use default (bf16-pass) MXU precision for f32 dots.
  assert max_err < 1e-1, f"kernel vs reference mismatch: {max_err}"

  print("KERNEL_OK")
</pallas_src>

<mosaic_0001>
module attributes {stable_mosaic.version = 11 : i64} {
  func.func @fused_gnn_kernel(%arg0: memref<8x16xf32, #tpu.memory_space<vmem>>, %arg1: memref<13x16x32xf32, #tpu.memory_space<vmem>>, %arg2: memref<12x8x8xf32, #tpu.memory_space<vmem>>, %arg3: memref<12x33x32xf32, #tpu.memory_space<vmem>>, %arg4: memref<64x128xf32, #tpu.memory_space<vmem>>, %arg5: memref<8x128xf32, #tpu.memory_space<vmem>>) attributes {dimension_semantics = [], scalar_prefetch = 0 : i64, scratch_operands = 0 : i64, tpu.core_type = #tpu.core_type<tc>} {
    %c0 = arith.constant 0 : index
    %c0_0 = arith.constant 0 : index
    %0 = vector.load %arg0[%c0, %c0_0] : memref<8x16xf32, #tpu.memory_space<vmem>>, vector<8x16xf32>
    %1 = vector.shape_cast %0 : vector<8x16xf32> to vector<1x8x16xf32>
    %2 = vector.shape_cast %1 : vector<1x8x16xf32> to vector<1x8x16xf32>
    %3 = vector.broadcast %2 : vector<1x8x16xf32> to vector<13x8x16xf32>
    %c0_1 = arith.constant 0 : index
    %c0_2 = arith.constant 0 : index
    %c0_3 = arith.constant 0 : index
    %4 = vector.load %arg1[%c0_1, %c0_2, %c0_3] : memref<13x16x32xf32, #tpu.memory_space<vmem>>, vector<13x16x32xf32>
    "tpu.trace_start"() <{level = 10 : i32, message = "cnf,cfd->cnd"}> : () -> ()
    %cst = arith.constant dense<0.000000e+00> : vector<13x8x32xf32>
    %5 = tpu.matmul %3, %4, %cst {dimension_numbers = #tpu.dot_dimension_numbers<[2], [1], [1], [2], [0, 0, 0, 1, 1, 2], [0], [0]>} : vector<13x8x16xf32>, vector<13x16x32xf32>, vector<13x8x32xf32> -> vector<13x8x32xf32>
    "tpu.trace_stop"() : () -> ()
    %6 = vector.extract_strided_slice %5 {offsets = [0, 0, 0], sizes = [12, 8, 32], strides = [1, 1, 1]} : vector<13x8x32xf32> to vector<12x8x32xf32>
    %7 = vector.extract_strided_slice %5 {offsets = [12, 0, 0], sizes = [1, 8, 32], strides = [1, 1, 1]} : vector<13x8x32xf32> to vector<1x8x32xf32>
    %8 = vector.shape_cast %7 : vector<1x8x32xf32> to vector<8x32xf32>
    %9 = tpu.transpose %8, [1, 0] : vector<8x32xf32> -> vector<32x8xf32>
    %10 = vector.extract_strided_slice %9 {offsets = [0, 0], sizes = [12, 8], strides = [1, 1]} : vector<32x8xf32> to vector<12x8xf32>
    %11 = vector.extract_strided_slice %9 {offsets = [16, 0], sizes = [12, 8], strides = [1, 1]} : vector<32x8xf32> to vector<12x8xf32>
    %12 = vector.shape_cast %11 : vector<12x8xf32> to vector<12x8x1xf32>
    %13 = vector.shape_cast %10 : vector<12x8xf32> to vector<12x1x8xf32>
    %14 = vector.broadcast %12 : vector<12x8x1xf32> to vector<12x8x8xf32>
    %15 = vector.broadcast %13 : vector<12x1x8xf32> to vector<12x8x8xf32>
    %16 = arith.addf %14, %15 : vector<12x8x8xf32>
    %cst_4 = arith.constant 0.000000e+00 : f32
    %17 = vector.broadcast %cst_4 : f32 to vector<12x8x8xf32>
    %18 = arith.cmpf ogt, %16, %17 : vector<12x8x8xf32>
    %cst_5 = arith.constant 2.000000e-01 : f32
    %19 = vector.broadcast %cst_5 : f32 to vector<12x8x8xf32>
    %20 = arith.mulf %19, %16 : vector<12x8x8xf32>
    %21 = arith.select %18, %16, %20 : vector<12x8x8xi1>, vector<12x8x8xf32>
    %c0_6 = arith.constant 0 : index
    %c0_7 = arith.constant 0 : index
    %c0_8 = arith.constant 0 : index
    %22 = vector.load %arg2[%c0_6, %c0_7, %c0_8] : memref<12x8x8xf32, #tpu.memory_space<vmem>>, vector<12x8x8xf32>
    %23 = arith.addf %21, %22 : vector<12x8x8xf32>
    %cst_9 = arith.constant dense<0xFF800000> : vector<12x8xf32>
    %24 = vector.multi_reduction <maximumf>, %23, %cst_9 [2] : vector<12x8x8xf32> to vector<12x8xf32>
    %25 = vector.shape_cast %24 : vector<12x8xf32> to vector<12x8x1xf32>
    %26 = vector.broadcast %25 : vector<12x8x1xf32> to vector<12x8x8xf32>
    %27 = arith.subf %23, %26 : vector<12x8x8xf32>
    %28 = math.exp %27 : vector<12x8x8xf32>
    %cst_10 = arith.constant dense<0.000000e+00> : vector<12x8xf32>
    %29 = vector.multi_reduction <add>, %28, %cst_10 [2] : vector<12x8x8xf32> to vector<12x8xf32>
    %30 = vector.shape_cast %29 : vector<12x8xf32> to vector<12x8x1xf32>
    %31 = vector.broadcast %30 : vector<12x8x1xf32> to vector<12x8x8xf32>
    %32 = arith.divf %28, %31 : vector<12x8x8xf32>
    "tpu.trace_start"() <{level = 10 : i32, message = "cij,cjd->cid"}> : () -> ()
    %cst_11 = arith.constant dense<0.000000e+00> : vector<12x8x32xf32>
    %33 = tpu.matmul %32, %6, %cst_11 {dimension_numbers = #tpu.dot_dimension_numbers<[2], [1], [1], [2], [0, 0, 0, 1, 1, 2], [0], [0]>} : vector<12x8x8xf32>, vector<12x8x32xf32>, vector<12x8x32xf32> -> vector<12x8x32xf32>
    "tpu.trace_stop"() : () -> ()
    %c0_12 = arith.constant 0 : index
    %c0_13 = arith.constant 0 : index
    %c0_14 = arith.constant 0 : index
    %34 = vector.load %arg3[%c0_12, %c0_13, %c0_14] : memref<12x33x32xf32, #tpu.memory_space<vmem>>, vector<12x33x32xf32>
    %35 = vector.extract_strided_slice %34 {offsets = [0, 32, 0], sizes = [12, 1, 32], strides = [1, 1, 1]} : vector<12x33x32xf32> to vector<12x1x32xf32>
    %36 = vector.broadcast %35 : vector<12x1x32xf32> to vector<12x8x32xf32>
    %37 = arith.addf %33, %36 : vector<12x8x32xf32>
    %cst_15 = arith.constant 0.000000e+00 : f32
    %38 = vector.broadcast %cst_15 : f32 to vector<12x8x32xf32>
    %39 = arith.cmpf ogt, %37, %38 : vector<12x8x32xf32>
    %cst_16 = arith.constant 0.000000e+00 : f32
    %40 = vector.broadcast %cst_16 : f32 to vector<12x8x32xf32>
    %41 = arith.minimumf %37, %40 : vector<12x8x32xf32>
    %42 = math.exp %41 : vector<12x8x32xf32>
    %cst_17 = arith.constant 1.000000e+00 : f32
    %43 = vector.broadcast %cst_17 : f32 to vector<12x8x32xf32>
    %44 = arith.subf %42, %43 : vector<12x8x32xf32>
    %45 = arith.select %39, %37, %44 : vector<12x8x32xi1>, vector<12x8x32xf32>
    %c0_18 = arith.constant 0 : index
    %c0_19 = arith.constant 0 : index
    %46 = vector.load %arg4[%c0_18, %c0_19] : memref<64x128xf32, #tpu.memory_space<vmem>>, vector<64x128xf32>
    %47 = vector.extract_strided_slice %34 {offsets = [0, 0, 0], sizes = [12, 32, 32], strides = [1, 1, 1]} : vector<12x33x32xf32> to vector<12x32x32xf32>
    "tpu.trace_start"() <{level = 10 : i32, message = "cid,cdk->cik"}> : () -> ()
    %cst_20 = arith.constant dense<0.000000e+00> : vector<12x8x32xf32>
    %48 = tpu.matmul %45, %47, %cst_20 {dimension_numbers = #tpu.dot_dimension_numbers<[2], [1], [1], [2], [0, 0, 0, 1, 1, 2], [0], [0]>} : vector<12x8x32xf32>, vector<12x32x32xf32>, vector<12x8x32xf32> -> vector<12x8x32xf32>
    "tpu.trace_stop"() : () -> ()
    %cst_21 = arith.constant dense<0.000000e+00> : vector<8x32xf32>
    %49 = vector.multi_reduction <add>, %48, %cst_21 [0] : vector<12x8x32xf32> to vector<8x32xf32>
    %50 = vector.extract_strided_slice %46 {offsets = [32, 0], sizes = [1, 32], strides = [1, 1]} : vector<64x128xf32> to vector<1x32xf32>
    %51 = vector.broadcast %50 : vector<1x32xf32> to vector<8x32xf32>
    %52 = arith.addf %49, %51 : vector<8x32xf32>
    %cst_22 = arith.constant 0.000000e+00 : f32
    %53 = vector.broadcast %cst_22 : f32 to vector<8x32xf32>
    %54 = arith.cmpf ogt, %52, %53 : vector<8x32xf32>
    %cst_23 = arith.constant 0.000000e+00 : f32
    %55 = vector.broadcast %cst_23 : f32 to vector<8x32xf32>
    %56 = arith.minimumf %52, %55 : vector<8x32xf32>
    %57 = math.exp %56 : vector<8x32xf32>
    %cst_24 = arith.constant 1.000000e+00 : f32
    %58 = vector.broadcast %cst_24 : f32 to vector<8x32xf32>
    %59 = arith.subf %57, %58 : vector<8x32xf32>
    %60 = arith.select %54, %52, %59 : vector<8x32xi1>, vector<8x32xf32>
    %61 = vector.extract_strided_slice %46 {offsets = [0, 0], sizes = [32, 16], strides = [1, 1]} : vector<64x128xf32> to vector<32x16xf32>
    %cst_25 = arith.constant dense<0.000000e+00> : vector<8x16xf32>
    %62 = tpu.matmul %60, %61, %cst_25 {dimension_numbers = #tpu.dot_dimension_numbers<[1], [0], [0], [1], [0, 0, 1, 1], [], []>} : vector<8x32xf32>, vector<32x16xf32>, vector<8x16xf32> -> vector<8x16xf32>
    %63 = vector.extract_strided_slice %46 {offsets = [33, 0], sizes = [1, 16], strides = [1, 1]} : vector<64x128xf32> to vector<1x16xf32>
    %64 = vector.broadcast %63 : vector<1x16xf32> to vector<8x16xf32>
    %65 = arith.addf %62, %64 : vector<8x16xf32>
    %cst_26 = arith.constant 0.000000e+00 : f32
    %66 = vector.broadcast %cst_26 : f32 to vector<8x16xf32>
    %67 = arith.cmpf ogt, %65, %66 : vector<8x16xf32>
    %cst_27 = arith.constant 0.000000e+00 : f32
    %68 = vector.broadcast %cst_27 : f32 to vector<8x16xf32>
    %69 = arith.minimumf %65, %68 : vector<8x16xf32>
    %70 = math.exp %69 : vector<8x16xf32>
    %cst_28 = arith.constant 1.000000e+00 : f32
    %71 = vector.broadcast %cst_28 : f32 to vector<8x16xf32>
    %72 = arith.subf %70, %71 : vector<8x16xf32>
    %73 = arith.select %67, %65, %72 : vector<8x16xi1>, vector<8x16xf32>
    %74 = vector.extract_strided_slice %46 {offsets = [40, 0], sizes = [16, 128], strides = [1, 1]} : vector<64x128xf32> to vector<16x128xf32>
    %cst_29 = arith.constant dense<0.000000e+00> : vector<8x128xf32>
    %75 = tpu.matmul %73, %74, %cst_29 {dimension_numbers = #tpu.dot_dimension_numbers<[1], [0], [0], [1], [0, 0, 1, 1], [], []>} : vector<8x16xf32>, vector<16x128xf32>, vector<8x128xf32> -> vector<8x128xf32>
    %76 = vector.extract_strided_slice %46 {offsets = [56, 0], sizes = [1, 128], strides = [1, 1]} : vector<64x128xf32> to vector<1x128xf32>
    %77 = vector.broadcast %76 : vector<1x128xf32> to vector<8x128xf32>
    %78 = arith.addf %75, %77 : vector<8x128xf32>
    %c0_30 = arith.constant 0 : index
    %c0_31 = arith.constant 0 : index
    %79 = vector.load %arg5[%c0_30, %c0_31] : memref<8x128xf32, #tpu.memory_space<vmem>>, vector<8x128xf32>
    tpu.vector_store %arg5[%c0_30, %c0_31], %78 {strides = array<i32>} : memref<8x128xf32, #tpu.memory_space<vmem>>, vector<8x128xf32>,
    return
  }
}

</mosaic_0001>

<bundles_post_ra>
// kernel: multi_relational_gnn_forward.1
= control target key start
LH: loop header
LB: loop body
LE: loop exit
PB: predicated region body
PF: predicated region fallthrough
CT: control target
= control target key end

     0   :  { %vm47_vm0 = vcmask 130048   ;;  %v344_v19 = vlaneseq  ;;  %vm535_vm4 = vcmask 64512   ;;  %s2405_s1 = inlined_call_operand.vmem [shape: f32[13,16,32], index: 1, kind: input, shape index: {}]   ;;  %s2406_s0 = inlined_call_operand.vmem [shape: f32[8,16], index: 0, kind: input, shape index: {}]   ;;  %s2407_s2 = inlined_call_operand.vmem [shape: f32[12,8,8], index: 2, kind: input, shape index: {}]   ;;  %s2408_s3 = inlined_call_operand.vmem [shape: f32[12,33,32], index: 3, kind: input, shape index: {}]   ;;  %s2409_s4 = inlined_call_operand.vmem [shape: f32[64,128], index: 4, kind: input, shape index: {}]   ;;  %s2410_s5 = inlined_call_operand.vmem [shape: f32[8,128], index: 5, kind: output, shape index: {}]  }
   0x1   :  { %v22_v0 = vld [vmem:[%s2405_s1 + $0x8] sm:$0xff]  ;;  %v21_v1 = vld [vmem:[%s2405_s1] sm:$0xff]  ;;  %v24_v4 = vld [vmem:[%s2405_s1 + $0x18] sm:$0xff] }
   0x2   :  { %65 = vmatpush.msra.mxu0 %v22_v0  ;;  %v1803_v2 = vld [vmem:[%s2406_s0] sm:$0xff]  ;;  %v30_v3 = vld [vmem:[%s2405_s1 + $0x48] sm:$0xff]  ;;  %v23_v5 = vld [vmem:[%s2405_s1 + $0x10] sm:$0xff]  ;;  %85 = vmatpush.msra.mxu1 %v24_v4  ;;  %v345_v20 = vshrl.u32 %v344_v19, 7 }
   0x3   :  { %v29_v6 = vld [vmem:[%s2405_s1 + $0x40] sm:$0xff]  ;;  %v38_v7 = vld [vmem:[%s2405_s1 + $0x88] sm:$0xff]  ;;  %v32_v8 = vld [vmem:[%s2405_s1 + $0x58] sm:$0xff] }
   0x4   :  { %66 = vmatpush.msra.mxu0 %v21_v1  ;;  %86 = vmatpush.msra.mxu1 %v23_v5  ;;  %v37_v9 = vld [vmem:[%s2405_s1 + $0x80] sm:$0xff]  ;;  %v31_v10 = vld [vmem:[%s2405_s1 + $0x50] sm:$0xff]  ;;  %v40_v11 = vld [vmem:[%s2405_s1 + $0x98] sm:$0xff] }
   0x5   :  { %1619 = vmatmul.msk.f32.vlgmr.msra.gmra.mxu0 %vm47_vm0, %v1803_v2  ;;  %1620 = vmatmul.msk.f32.vlgmr.msra.gmra.mxu1 %vm47_vm0, %v1803_v2  ;;  %v46_v12 = vld [vmem:[%s2405_s1 + $0xc8] sm:$0xff]  ;;  %v45_v13 = vld [vmem:[%s2405_s1 + $0xc0] sm:$0xff]  ;;  %v39_v14 = vld [vmem:[%s2405_s1 + $0x90] sm:$0xff] }
   0x6   :  { %145 = vmatpush.msrb.mxu0 %v30_v3  ;;  %165 = vmatpush.msrb.mxu1 %v32_v8  ;;  %v513_v53 = vld [vmem:[%s2407_s2 + $0x10] sm:$0xff]  ;;  %v512_v54 = vld [vmem:[%s2407_s2 + $0x8] sm:$0xff] }
   0x7   :  { %1675 = vset.pattern.permute.xlu2 %v345_v20  ;;  %1674 = vset.pattern.permute.xlu1 %v345_v20 }
   0x8   :  { %146 = vmatpush.msrb.mxu0 %v29_v6  ;;  %166 = vmatpush.msrb.mxu1 %v31_v10 }
   0xa   :  { %225 = vmatpush.msra.mxu0 %v38_v7  ;;  %245 = vmatpush.msra.mxu1 %v40_v11 }
   0xc   :  { %226 = vmatpush.msra.mxu0 %v37_v9  ;;  %246 = vmatpush.msra.mxu1 %v39_v14  ;;  %v517_v9 = vld [vmem:[%s2407_s2 + $0x30] sm:$0xff] }
   0xd   :  { %1623 = vmatmul.msk.f32.vlgmr.msrb.gmra.mxu0 %vm47_vm0, %v1803_v2  ;;  %1624 = vmatmul.msk.f32.vlgmr.msrb.gmra.mxu1 %vm47_vm0, %v1803_v2 }
   0xe   :  { %305 = vmatpush.msrb.mxu0 %v46_v12 }
  0x10   :  { %306 = vmatpush.msrb.mxu0 %v45_v13  ;;  %v516_v13 = vld [vmem:[%s2407_s2 + $0x28] sm:$0xff] }
  0x15   :  { %1627 = vmatmul.msk.f32.vlgmr.msra.gmra.mxu0 %vm47_vm0, %v1803_v2  ;;  %1628 = vmatmul.msk.f32.vlgmr.msra.gmra.mxu1 %vm47_vm0, %v1803_v2 }
  0x1d   :  { %1631 = vmatmul.msk.f32.vlgmr.msrb.gmra.mxu0 %vm47_vm0, %v1803_v2 }
  0x82   :  { %v68_v15 = vpop.f32.mrf.mxu0 }
  0x83   :  { %914 = vmatpush.msrb.mxu1 %v68_v15 }
  0x8a   :  { %v148_v16 = vpop.f32.mrf.mxu0 }
  0x8b   :  { %1006 = vmatpush.msra.mxu1 %v148_v16 }
  0x92   :  { %v1855_v17 = vpop.f32.mrf.mxu0 }
  0x9a   :  { %v308_v18 = vpop.f32.mrf.mxu0 }
  0x9b   :  { %311 = vxpose.xlu0.b32.start.end [1/1] (short) (narrow) %v308_v18, 32 }
 0x102   :  { %1673 = vset.pattern.permute.xlu0 %v345_v20 }
 0x13f   :  { %v1857_v21 = vpop.trf.xlu0 }
 0x140   :  { %v434_v39 = vrot.slane %v1857_v21, 6  ;;  %v430_v40 = vrot.slane %v1857_v21, 2  ;;  %v429_v41 = vrot.slane %v1857_v21, 1  ;;  %v433_v52 = vrot.slane %v1857_v21, 5 }
 0x141   :  { %v439_v60 = vperm.slane %v1857_v21, 0  ;;  %v431_v12 = vrot.slane %v1857_v21, 3 }
 0x142   :  { %v445_v42 = vperm.slane %v434_v39, 0  ;;  %v441_v43 = vperm.slane %v430_v40, 0  ;;  %v440_v44 = vperm.slane %v429_v41, 0  ;;  %v444_v0 = vperm.slane %v433_v52, 0 }
 0x147   :  { %v1859_v22 = vpop.trf.xlu0 }
 0x148   :  { %v436_v50 = vrot.slane %v1859_v22, 1  ;;  %v437_v10 = vrot.slane %v1859_v22, 2  ;;  %v447_v40 = vperm.slane %v1859_v22, 0 }
 0x14a   :  { %v448_v63 = vperm.slane %v436_v50, 0  ;;  %v449_v20 = vperm.slane %v437_v10, 0  ;;  %v514_v50 = vld [vmem:[%s2407_s2 + $0x18] sm:$0xff] }
 0x14f   :  { %v329_v23 = vpop.trf.xlu0 }
 0x150   :  { %v357_v24 = vperm.slane %v329_v23, 2  ;;  %v350_v25 = vperm.slane %v329_v23, 1  ;;  %v343_v26 = vperm.slane %v329_v23, 0  ;;  %v378_v27 = vperm.slane %v329_v23, 5 }
 0x151   :  { %v385_v28 = vperm.slane %v329_v23, 6  ;;  %v364_v31 = vperm.slane %v329_v23, 3  ;;  %v371_v33 = vperm.slane %v329_v23, 4  ;;  %v392_v35 = vperm.slane %v329_v23, 7 }
 0x152   :  { %362 = vperm.xlu1 %1674, %v357_v24   ;;  %355 = vperm.xlu0 %1673, %v350_v25   ;;  %v442_v24 = vperm.slane %v431_v12, 0 }
 0x153   :  { %348 = vperm.xlu2 %1675, %v343_v26  }
 0x157   :  { %v330_v29 = vpop.trf.xlu0 }
 0x158   :  { %v406_v30 = vperm.slane %v330_v29, 1  ;;  %v413_v32 = vperm.slane %v330_v29, 2  ;;  %v399_v34 = vperm.slane %v330_v29, 0  ;;  %v420_v36 = vperm.slane %v330_v29, 3 }
 0x15a   :  { %383 = vperm.xlu1 %1674, %v378_v27  }
 0x15b   :  { %390 = vperm.xlu2 %1675, %v385_v28  }
 0x162   :  { %369 = vperm.xlu1 %1674, %v364_v31   ;;  %v520_v31 = vld [vmem:[%s2407_s2 + $0x48] sm:$0xff] }
 0x163   :  { %411 = vperm.xlu2 %1675, %v406_v30  }
 0x16a   :  { %376 = vperm.xlu1 %1674, %v371_v33   ;;  %v511_v33 = vld [vmem:[%s2407_s2] sm:$0xff] }
 0x16b   :  { %418 = vperm.xlu2 %1675, %v413_v32  }
 0x172   :  { %397 = vperm.xlu1 %1674, %v392_v35  }
 0x173   :  { %404 = vperm.xlu2 %1675, %v399_v34   ;;  %v432_v34 = vrot.slane %v1857_v21, 4 }
 0x175   :  { %v443_v41 = vperm.slane %v432_v34, 0 }
 0x17a   :  { %425 = vperm.xlu1 %1674, %v420_v36  }
 0x1ad   :  { %v349_v37 = vpop.permute.xlu2 %348 }
 0x1ae   :  { %v463_v1 = vadd.f32 %v439_v60, %v349_v37 }
 0x1b0   :  { %v487_v16 = vmul.f32 0.2, %v463_v1  ;;  %vm475_vm6 = vcmp.gt.f32.partialorder %v463_v1, 0.0 }
 0x1b2   :  { %v499_v32 = vsel %vm475_vm6, %v463_v1, %v487_v16  ;;  %v515_v1 = vld [vmem:[%s2407_s2 + $0x20] sm:$0xff] }
 0x1b3   :  { %v1906_v37 = vadd.f32 %v511_v33, %v499_v32 }
 0x1b5   :  { %v391_v38 = vpop.permute.xlu2 %390 }
 0x1b6   :  { %v469_v47 = vadd.f32 %v445_v42, %v391_v38 }
 0x1b8   :  { %v493_v57 = vmul.f32 0.2, %v469_v47  ;;  %vm481_vm3 = vcmp.gt.f32.partialorder %v469_v47, 0.0 }
 0x1ba   :  { %v505_v8 = vsel %vm481_vm3, %v469_v47, %v493_v57 }
 0x1bb   :  { %v1889_v15 = vadd.f32 %v517_v9, %v505_v8 }
 0x1bd   :  { %v412_v51 = vpop.permute.xlu2 %411  ;;  %v554_v27 = vsel %vm535_vm4, %v1889_v15, -inf }
 0x1be   :  { %v472_v6 = vadd.f32 %v448_v63, %v412_v51  ;;  %v435_v51 = vrot.slane %v1857_v21, 7  ;;  %v519_v63 = vld [vmem:[%s2407_s2 + $0x40] sm:$0xff] }
 0x1c0   :  { %v496_v18 = vmul.f32 0.2, %v472_v6  ;;  %vm484_vm7 = vcmp.gt.f32.partialorder %v472_v6, 0.0 }
 0x1c2   :  { %v508_v30 = vsel %vm484_vm7, %v472_v6, %v496_v18 }
 0x1c3   :  { %v1904_v36 = vadd.f32 %v520_v31, %v508_v30 }
 0x1c4   :  { %v363_v45 = vpop.permute.xlu1 %362  ;;  %v356_v46 = vpop.permute.xlu0 %355 }
 0x1c5   :  { %v465_v48 = vadd.f32 %v441_v43, %v363_v45  ;;  %v464_v49 = vadd.f32 %v440_v44, %v356_v46  ;;  %v419_v14 = vpop.permute.xlu2 %418  ;;  %v563_v43 = vsel %vm535_vm4, %v1904_v36, -inf  ;;  %v536_v44 = vsel %vm535_vm4, %v1906_v37, -inf }
 0x1c6   :  { %v473_v25 = vadd.f32 %v449_v20, %v419_v14 }
 0x1c7   :  { %vm477_vm1 = vcmp.gt.f32.partialorder %v465_v48, 0.0  ;;  %v489_v55 = vmul.f32 0.2, %v465_v48  ;;  %vm476_vm2 = vcmp.gt.f32.partialorder %v464_v49, 0.0  ;;  %v488_v56 = vmul.f32 0.2, %v464_v49 }
 0x1c8   :  { %v497_v35 = vmul.f32 0.2, %v473_v25  ;;  %vm485_vm8 = vcmp.gt.f32.partialorder %v473_v25, 0.0 }
 0x1c9   :  { %v501_v58 = vsel %vm477_vm1, %v465_v48, %v489_v55  ;;  %v500_v59 = vsel %vm476_vm2, %v464_v49, %v488_v56  ;;  %v521_v48 = vld [vmem:[%s2407_s2 + $0x50] sm:$0xff]  ;;  %v446_v56 = vperm.slane %v435_v51, 0 }
 0x1ca   :  { %v1873_v61 = vadd.f32 %v513_v53, %v501_v58  ;;  %v1875_v62 = vadd.f32 %v512_v54, %v500_v59  ;;  %v509_v45 = vsel %vm485_vm8, %v473_v25, %v497_v35  ;;  %v26_v25 = vld [vmem:[%s2405_s1 + $0x28] sm:$0xff]  ;;  %v28_v35 = vld [vmem:[%s2405_s1 + $0x38] sm:$0xff] }
 0x1cb   :  { %v1920_v52 = vadd.f32 %v521_v48, %v509_v45  ;;  %105 = vmatpush.msra.mxu2 %v26_v25  ;;  %125 = vmatpush.msra.mxu3 %v28_v35 }
 0x1cc   :  { %v384_v3 = vpop.permute.xlu1 %383  ;;  %v542_v4 = vsel %vm535_vm4, %v1873_v61, -inf  ;;  %v539_v5 = vsel %vm535_vm4, %v1875_v62, -inf }
 0x1cd   :  { %v468_v7 = vadd.f32 %v444_v0, %v384_v3  ;;  %543 = vmax.xlane.f32.xlu1 %v542_v4  ;;  %540 = vmax.xlane.f32.xlu2 %v539_v5  ;;  %v405_v39 = vpop.permute.xlu2 %404  ;;  %v566_v58 = vsel %vm535_vm4, %v1920_v52, -inf  ;;  %v438_v3 = vrot.slane %v1859_v22, 3  ;;  %v518_v22 = vld [vmem:[%s2407_s2 + $0x38] sm:$0xff] }
 0x1ce   :  { %v471_v46 = vadd.f32 %v447_v40, %v405_v39  ;;  %v42_v39 = vld [vmem:[%s2405_s1 + $0xa8] sm:$0xff] }
 0x1cf   :  { %vm480_vm5 = vcmp.gt.f32.partialorder %v468_v7, 0.0  ;;  %v492_v11 = vmul.f32 0.2, %v468_v7 }
 0x1d0   :  { %v495_v54 = vmul.f32 0.2, %v471_v46  ;;  %vm483_vm10 = vcmp.gt.f32.partialorder %v471_v46, 0.0 }
 0x1d1   :  { %v504_v19 = vsel %vm480_vm5, %v468_v7, %v492_v11  ;;  %v450_v7 = vperm.slane %v438_v3, 0 }
 0x1d2   :  { %v1891_v23 = vadd.f32 %v516_v13, %v504_v19  ;;  %v507_v21 = vsel %vm483_vm10, %v471_v46, %v495_v54  ;;  %v522_v19 = vld [vmem:[%s2407_s2 + $0x58] sm:$0xff] }
 0x1d3   :  { %v1935_v4 = vadd.f32 %v519_v63, %v507_v21 }
 0x1d4   :  { %v370_v26 = vpop.permute.xlu1 %369  ;;  %v551_v28 = vsel %vm535_vm4, %v1891_v23, -inf }
 0x1d5   :  { %v466_v29 = vadd.f32 %v442_v24, %v370_v26  ;;  %555 = vmax.xlane.f32.xlu1 %v554_v27  ;;  %552 = vmax.xlane.f32.xlu2 %v551_v28  ;;  %v560_v9 = vsel %vm535_vm4, %v1935_v4, -inf  ;;  %v25_v26 = vld [vmem:[%s2405_s1 + $0x20] sm:$0xff]  ;;  %v34_v27 = vld [vmem:[%s2405_s1 + $0x68] sm:$0xff] }
 0x1d6   :  { %106 = vmatpush.msra.mxu2 %v25_v26  ;;  %v33_v28 = vld [vmem:[%s2405_s1 + $0x60] sm:$0xff] }
 0x1d7   :  { %v490_v38 = vmul.f32 0.2, %v466_v29  ;;  %vm478_vm9 = vcmp.gt.f32.partialorder %v466_v29, 0.0  ;;  %1621 = vmatmul.msk.f32.vlgmr.msra.gmra.mxu2 %vm47_vm0, %v1803_v2 }
 0x1d8   :  { %185 = vmatpush.msrb.mxu2 %v34_v27 }
 0x1d9   :  { %v502_v49 = vsel %vm478_vm9, %v466_v29, %v490_v38  ;;  %v27_v38 = vld [vmem:[%s2405_s1 + $0x30] sm:$0xff] }
 0x1da   :  { %v1922_v53 = vadd.f32 %v514_v50, %v502_v49  ;;  %186 = vmatpush.msrb.mxu2 %v33_v28  ;;  %126 = vmatpush.msra.mxu3 %v27_v38 }
 0x1db   :  { %1622 = vmatmul.msk.f32.vlgmr.msra.gmra.mxu3 %vm47_vm0, %v1803_v2 }
 0x1dc   :  { %v377_v42 = vpop.permute.xlu1 %376  ;;  %v545_v59 = vsel %vm535_vm4, %v1922_v53, -inf  ;;  %265 = vmatpush.msra.mxu2 %v42_v39 }
 0x1dd   :  { %v467_v47 = vadd.f32 %v443_v41, %v377_v42  ;;  %564 = vmax.xlane.f32.xlu1 %v563_v43  ;;  %537 = vmax.xlane.f32.xlu2 %v536_v44 }
 0x1df   :  { %v491_v55 = vmul.f32 0.2, %v467_v47  ;;  %vm479_vm11 = vcmp.gt.f32.partialorder %v467_v47, 0.0  ;;  %1625 = vmatmul.msk.f32.vlgmr.msrb.gmra.mxu2 %vm47_vm0, %v1803_v2 }
 0x1e1   :  { %v503_v0 = vsel %vm479_vm11, %v467_v47, %v491_v55  ;;  %v41_v47 = vld [vmem:[%s2405_s1 + $0xa0] sm:$0xff] }
 0x1e2   :  { %v1937_v5 = vadd.f32 %v515_v1, %v503_v0  ;;  %266 = vmatpush.msra.mxu2 %v41_v47 }
 0x1e4   :  { %v398_v57 = vpop.permute.xlu1 %397  ;;  %v548_v10 = vsel %vm535_vm4, %v1937_v5, -inf }
 0x1e5   :  { %v470_v60 = vadd.f32 %v446_v56, %v398_v57  ;;  %567 = vmax.xlane.f32.xlu1 %v566_v58  ;;  %546 = vmax.xlane.f32.xlu2 %v545_v59  ;;  %v44_v58 = vld [vmem:[%s2405_s1 + $0xb8] sm:$0xff] }
 0x1e7   :  { %v494_v6 = vmul.f32 0.2, %v470_v60  ;;  %vm482_vm12 = vcmp.gt.f32.partialorder %v470_v60, 0.0  ;;  %1629 = vmatmul.msk.f32.vlgmr.msra.gmra.mxu2 %vm47_vm0, %v1803_v2 }
 0x1e9   :  { %v506_v12 = vsel %vm482_vm12, %v470_v60, %v494_v6 }
 0x1ea   :  { %v1946_v13 = vadd.f32 %v518_v22, %v506_v12 }
 0x1ec   :  { %v426_v8 = vpop.permute.xlu1 %425  ;;  %v557_v16 = vsel %vm535_vm4, %v1946_v13, -inf }
 0x1ed   :  { %v474_v11 = vadd.f32 %v450_v7, %v426_v8  ;;  %561 = vmax.xlane.f32.xlu1 %v560_v9  ;;  %549 = vmax.xlane.f32.xlu2 %v548_v10 }
 0x1ef   :  { %v498_v14 = vmul.f32 0.2, %v474_v11  ;;  %vm486_vm13 = vcmp.gt.f32.partialorder %v474_v11, 0.0 }
 0x1f1   :  { %v510_v18 = vsel %vm486_vm13, %v474_v11, %v498_v14 }
 0x1f2   :  { %v1953_v20 = vadd.f32 %v522_v19, %v510_v18 }
 0x1f4   :  { %v569_v24 = vsel %vm535_vm4, %v1953_v20, -inf }
 0x1f5   :  { %558 = vmax.xlane.f32.xlu2 %v557_v16 }
 0x1fd   :  { %570 = vmax.xlane.f32.xlu2 %v569_v24 }
 0x240   :  { %v544_v29 = vpop.xlane.xlu1 %543  ;;  %v541_v30 = vpop.xlane.xlu2 %540 }
 0x241   :  { %v574_v31 = vsub.f32 %v1873_v61, %v544_v29  ;;  %v573_v32 = vsub.f32 %v1875_v62, %v541_v30 }
 0x243   :  { %v588_v33 = vmul.f32 1.442695, %v574_v31  ;;  %v586_v34 = vmul.f32 1.442695, %v573_v32 }
 0x245   :  { %1688 = vpow2.f32 %v588_v33 }
 0x246   :  { %1690 = vpow2.f32 %v586_v34 }
 0x248   :  { %v556_v61 = vpop.xlane.xlu1 %555  ;;  %v553_v62 = vpop.xlane.xlu2 %552 }
 0x249   :  { %v577_v40 = vsub.f32 %v1891_v23, %v553_v62  ;;  %v578_v44 = vsub.f32 %v1889_v15, %v556_v61  ;;  %v36_v23 = vld [vmem:[%s2405_s1 + $0x78] sm:$0xff]  ;;  %v35_v15 = vld [vmem:[%s2405_s1 + $0x70] sm:$0xff] }
 0x24a   :  { %205 = vmatpush.msrb.mxu3 %v36_v23 }
 0x24b   :  { %v1987_v41 = vpop.eup %1688  ;;  %v594_v42 = vmul.f32 1.442695, %v577_v40  ;;  %v596_v48 = vmul.f32 1.442695, %v578_v44 }
 0x24c   :  { %v1989_v43 = vpop.eup %1690  ;;  %v614_v45 = vsel %vm535_vm4, %v1987_v41, 0.0  ;;  %206 = vmatpush.msrb.mxu3 %v35_v15 }
 0x24d   :  { %615 = vadd.xlane.f32.xlu2 %v614_v45  ;;  %v611_v46 = vsel %vm535_vm4, %v1989_v43, 0.0  ;;  %1692 = vpow2.f32 %v594_v42  ;;  %1626 = vmatmul.msk.f32.vlgmr.msrb.gmra.mxu3 %vm47_vm0, %v1803_v2 }
 0x24e   :  { %612 = vadd.xlane.f32.xlu1 %v611_v46  ;;  %1694 = vpow2.f32 %v596_v48  ;;  %285 = vmatpush.msra.mxu3 %v44_v58 }
 0x250   :  { %v565_v49 = vpop.xlane.xlu1 %564  ;;  %v538_v50 = vpop.xlane.xlu2 %537 }
 0x251   :  { %v572_v51 = vsub.f32 %v1906_v37, %v538_v50  ;;  %v581_v56 = vsub.f32 %v1904_v36, %v565_v49  ;;  %v43_v37 = vld [vmem:[%s2405_s1 + $0xb0] sm:$0xff] }
 0x252   :  { %286 = vmatpush.msra.mxu3 %v43_v37 }
 0x253   :  { %v584_v54 = vmul.f32 1.442695, %v572_v51  ;;  %v2010_v55 = vpop.eup %1692  ;;  %v602_v59 = vmul.f32 1.442695, %v581_v56 }
 0x254   :  { %v623_v57 = vsel %vm535_vm4, %v2010_v55, 0.0  ;;  %v2022_v63 = vpop.eup %1694 }
 0x255   :  { %1696 = vpow2.f32 %v584_v54  ;;  %1630 = vmatmul.msk.f32.vlgmr.msra.gmra.mxu3 %vm47_vm0, %v1803_v2  ;;  %v626_v6 = vsel %vm535_vm4, %v2022_v63, 0.0 }
 0x256   :  { %624 = vadd.xlane.f32.xlu1 %v623_v57  ;;  %1698 = vpow2.f32 %v602_v59 }
 0x258   :  { %v568_v60 = vpop.xlane.xlu1 %567  ;;  %v547_v21 = vpop.xlane.xlu2 %546 }
 0x259   :  { %v575_v36 = vsub.f32 %v1922_v53, %v547_v21  ;;  %v582_v3 = vsub.f32 %v1920_v52, %v568_v60 }
 0x25a   :  { %v108_v35 = vpop.f32.mrf.mxu2 }
 0x25b   :  { %v590_v0 = vmul.f32 1.442695, %v575_v36  ;;  %v2026_v1 = vpop.eup %1696  ;;  %v604_v53 = vmul.f32 1.442695, %v582_v3  ;;  %960 = vmatpush.msrb.mxu3 %v108_v35 }
 0x25c   :  { %v608_v7 = vsel %vm535_vm4, %v2026_v1, 0.0  ;;  %v2034_v10 = vpop.eup %1698 }
 0x25d   :  { %1700 = vpow2.f32 %v590_v0  ;;  %609 = vadd.xlane.f32.xlu2 %v608_v7  ;;  %v635_v22 = vsel %vm535_vm4, %v2034_v10, 0.0 }
 0x25e   :  { %627 = vadd.xlane.f32.xlu1 %v626_v6  ;;  %1702 = vpow2.f32 %v604_v53  ;;  %v128_v37 = vpop.f32.mrf.mxu3 }
 0x25f   :  { %983 = vmatpush.msra.mxu0 %v128_v37 }
 0x260   :  { %v550_v8 = vpop.xlane.xlu2 %549  ;;  %v562_v9 = vpop.xlane.xlu1 %561 }
 0x261   :  { %v576_v2 = vsub.f32 %v1937_v5, %v550_v8  ;;  %v580_v52 = vsub.f32 %v1935_v4, %v562_v9 }
 0x262   :  { %v188_v62 = vpop.f32.mrf.mxu2 }
 0x263   :  { %v592_v11 = vmul.f32 1.442695, %v576_v2  ;;  %v2036_v12 = vpop.eup %1700  ;;  %v600_v16 = vmul.f32 1.442695, %v580_v52  ;;  %1052 = vmatpush.msra.mxu3 %v188_v62 }
 0x264   :  { %v617_v14 = vsel %vm535_vm4, %v2036_v12, 0.0  ;;  %v2044_v19 = vpop.eup %1702 }
 0x265   :  { %1704 = vpow2.f32 %v592_v11  ;;  %636 = vadd.xlane.f32.xlu2 %v635_v22  ;;  %618 = vadd.xlane.f32.xlu0 %v617_v14  ;;  %v638_v4 = vsel %vm535_vm4, %v2044_v19, 0.0 }
 0x266   :  { %1706 = vpow2.f32 %v600_v16 }
 0x268   :  { %v559_v18 = vpop.xlane.xlu2 %558 }
 0x269   :  { %v579_v5 = vsub.f32 %v1946_v13, %v559_v18 }
 0x26b   :  { %v598_v24 = vmul.f32 1.442695, %v579_v5  ;;  %v2046_v25 = vpop.eup %1704  ;;  %v268_v5 = vpop.f32.mrf.mxu2 }
 0x26c   :  { %v620_v26 = vsel %vm535_vm4, %v2046_v25, 0.0  ;;  %v2053_v29 = vpop.eup %1706 }
 0x26d   :  { %1708 = vpow2.f32 %v598_v24  ;;  %639 = vadd.xlane.f32.xlu2 %v638_v4  ;;  %621 = vadd.xlane.f32.xlu1 %v620_v26  ;;  %v632_v32 = vsel %vm535_vm4, %v2053_v29, 0.0 }
 0x270   :  { %v571_v27 = vpop.xlane.xlu2 %570 }
 0x271   :  { %v583_v28 = vsub.f32 %v1953_v20, %v571_v27  ;;  %v88_v20 = vpop.f32.mrf.mxu1 }
 0x272   :  { %937 = vmatpush.msrb.mxu2 %v88_v20 }
 0x273   :  { %v2055_v13 = vpop.eup %1708  ;;  %v606_v30 = vmul.f32 1.442695, %v583_v28 }
 0x274   :  { %v629_v31 = vsel %vm535_vm4, %v2055_v13, 0.0 }
 0x275   :  { %1710 = vpow2.f32 %v606_v30  ;;  %633 = vadd.xlane.f32.xlu2 %v632_v32  ;;  %630 = vadd.xlane.f32.xlu1 %v629_v31 }
 0x279   :  { %v168_v38 = vpop.f32.mrf.mxu1 }
 0x27a   :  { %1029 = vmatpush.msra.mxu2 %v168_v38 }
 0x27b   :  { %v2061_v33 = vpop.eup %1710 }
 0x27c   :  { %v641_v34 = vsel %vm535_vm4, %v2061_v33, 0.0 }
 0x27d   :  { %642 = vadd.xlane.f32.xlu1 %v641_v34 }
 0x281   :  { %v248_v11 = vpop.f32.mrf.mxu1 }
 0x2c0   :  { %v616_v39 = vpop.xlane.xlu2 %615 }
 0x2c1   :  { %v613_v61 = vpop.xlane.xlu1 %612  ;;  %1712 = vrcp.f32 %v616_v39  ;;  %v685_v49 = vand.u32 2147483648, %v616_v39  ;;  %v683_v54 = vand.u32 2147483647, %v616_v39  ;;  %vm679_vm1 = vweird.f32 %v616_v39 }
 0x2c2   :  { %1714 = vrcp.f32 %v613_v61  ;;  %v670_v15 = vand.u32 2147483648, %v613_v61  ;;  %v668_v51 = vand.u32 2147483647, %v613_v61  ;;  %vm664_vm2 = vweird.f32 %v613_v61 }
 0x2c3   :  { %v686_v36 = vor.u32 1.1754944e-38, %v685_v49  ;;  %vm684_vm7 = vcmp.eq.f32.partialorder %v683_v54, 8.507059e+37 }
 0x2c4   :  { %v671_v60 = vor.u32 1.1754944e-38, %v670_v15  ;;  %vm669_vm6 = vcmp.eq.f32.partialorder %v668_v51, 8.507059e+37 }
 0x2c7   :  { %v1713_v40 = vpop.eup %1712 }
 0x2c8   :  { %v1715_v42 = vpop.eup %1714  ;;  %v675_v44 = vmul.f32 %v1713_v40, %v616_v39  ;;  %vm680_vm14 = vweird.f32 %v1713_v40 }
 0x2c9   :  { %v660_v45 = vmul.f32 %v1715_v42, %v613_v61  ;;  %v625_v46 = vpop.xlane.xlu1 %624  ;;  %vm665_vm15 = vweird.f32 %v1715_v42  ;;  %vm2065_vm3 = vmor %vm679_vm1, %vm680_vm14 }
 0x2ca   :  { %v676_v47 = vsub.f32 1.0, %v675_v44  ;;  %1716 = vrcp.f32 %v625_v46  ;;  %vm666_vm5 = vmor %vm664_vm2, %vm665_vm15  ;;  %v730_v22 = vand.u32 2147483648, %v625_v46  ;;  %v728_v16 = vand.u32 2147483647, %v625_v46 }
 0x2cb   :  { %v661_v23 = vsub.f32 1.0, %v660_v45  ;;  %vm724_vm9 = vweird.f32 %v625_v46 }
 0x2cc   :  { %v677_v48 = vmul.f32 %v1713_v40, %v676_v47  ;;  %v731_v26 = vor.u32 1.1754944e-38, %v730_v22  ;;  %vm729_vm11 = vcmp.eq.f32.partialorder %v728_v16, 8.507059e+37 }
 0x2cd   :  { %v662_v50 = vmul.f32 %v1715_v42, %v661_v23 }
 0x2ce   :  { %v678_v56 = vadd.f32 %v1713_v40, %v677_v48 }
 0x2cf   :  { %v663_v57 = vadd.f32 %v1715_v42, %v662_v50 }
 0x2d0   :  { %v1717_v59 = vpop.eup %1716  ;;  %v682_v21 = vsel %vm2065_vm3, %v1713_v40, %v678_v56  ;;  %v2071_v7 = vpop.xlane.xlu2 %609 }
 0x2d1   :  { %v667_v0 = vsel %vm666_vm5, %v1715_v42, %v663_v57  ;;  %v720_v3 = vmul.f32 %v1717_v59, %v625_v46  ;;  %v628_v6 = vpop.xlane.xlu1 %627  ;;  %v687_v8 = vsel %vm684_vm7, %v686_v36, %v682_v21  ;;  %vm725_vm8 = vweird.f32 %v1717_v59  ;;  %v208_v44 = vpop.f32.mrf.mxu3 }
 0x2d2   :  { %v672_v53 = vsel %vm669_vm6, %v671_v60, %v667_v0  ;;  %1718 = vrcp.f32 %v628_v6  ;;  %v688_v14 = vmul.f32 %v1987_v41, %v687_v8  ;;  %vm726_vm10 = vmor %vm724_vm9, %vm725_vm8  ;;  %v743_v34 = vand.u32 2147483647, %v628_v6  ;;  %1075 = vmatpush.msrb.mxu0 %v208_v44 }
 0x2d3   :  { %v721_v9 = vsub.f32 1.0, %v720_v3  ;;  %1720 = vrcp.f32 %v2071_v7  ;;  %v673_v2 = vmul.f32 %v1989_v43, %v672_v53  ;;  %v745_v38 = vand.u32 2147483648, %v628_v6 }
 0x2d4   :  { %1634 = vmatmul.msk.f32.vlgmr.msrb.gmra.mxu3 %vm535_vm4, %v688_v14  ;;  %v655_v39 = vand.u32 2147483648, %v2071_v7  ;;  %v653_v62 = vand.u32 2147483647, %v2071_v7  ;;  %vm739_vm14 = vweird.f32 %v628_v6  ;;  %vm649_vm1 = vweird.f32 %v2071_v7 }
 0x2d5   :  { %v722_v52 = vmul.f32 %v1717_v59, %v721_v9  ;;  %1633 = vmatmul.msk.f32.vlgmr.msrb.gmra.mxu2 %vm535_vm4, %v673_v2  ;;  %1144 = vmatpush.msrb.mxu3 %v268_v5  ;;  %v746_v15 = vor.u32 1.1754944e-38, %v745_v38  ;;  %vm744_vm3 = vcmp.eq.f32.partialorder %v743_v34, 8.507059e+37 }
 0x2d6   :  { %1121 = vmatpush.msrb.mxu2 %v248_v11  ;;  %vm654_vm5 = vcmp.eq.f32.partialorder %v653_v62, 8.507059e+37 }
 0x2d7   :  { %v723_v18 = vadd.f32 %v1717_v59, %v722_v52 }
 0x2d8   :  { %v1719_v24 = vpop.eup %1718  ;;  %v2078_v28 = vpop.xlane.xlu0 %618 }
 0x2d9   :  { %v1721_v4 = vpop.eup %1720  ;;  %v727_v43 = vsel %vm726_vm10, %v1717_v59, %v723_v18  ;;  %v735_v27 = vmul.f32 %v1719_v24, %v628_v6  ;;  %v2080_v30 = vpop.xlane.xlu2 %636  ;;  %1722 = vrcp.f32 %v2078_v28  ;;  %vm740_vm12 = vweird.f32 %v1719_v24 }
 0x2da   :  { %v645_v41 = vmul.f32 %v1721_v4, %v2071_v7  ;;  %v732_v31 = vsel %vm729_vm11, %v731_v26, %v727_v43  ;;  %1724 = vrcp.f32 %v2080_v30  ;;  %vm650_vm13 = vweird.f32 %v1721_v4  ;;  %vm2088_vm15 = vmor %vm739_vm14, %vm740_vm12  ;;  %v288_v26 = vpop.f32.mrf.mxu3 }
 0x2db   :  { %v736_v32 = vsub.f32 1.0, %v735_v27  ;;  %v733_v40 = vmul.f32 %v2010_v55, %v732_v31  ;;  %vm651_vm2 = vmor %vm649_vm1, %vm650_vm13  ;;  %v656_v55 = vor.u32 1.1754944e-38, %v655_v39  ;;  %v700_v59 = vand.u32 2147483648, %v2078_v28 }
 0x2dc   :  { %v646_v20 = vsub.f32 1.0, %v645_v41  ;;  %v698_v21 = vand.u32 2147483647, %v2078_v28  ;;  %v788_v0 = vand.u32 2147483647, %v2080_v30  ;;  %v790_v3 = vand.u32 2147483648, %v2080_v30 }
 0x2dd   :  { %v737_v35 = vmul.f32 %v1719_v24, %v736_v32  ;;  %1637 = vmatmul.msk.f32.vlgmr.msra.gmra.mxu2 %vm535_vm4, %v733_v40  ;;  %vm694_vm7 = vweird.f32 %v2078_v28  ;;  %v701_v2 = vor.u32 1.1754944e-38, %v700_v59  ;;  %vm784_vm10 = vweird.f32 %v2080_v30 }
 0x2de   :  { %v647_v61 = vmul.f32 %v1721_v4, %v646_v20  ;;  %vm699_vm11 = vcmp.eq.f32.partialorder %v698_v21, 8.507059e+37  ;;  %vm789_vm13 = vcmp.eq.f32.partialorder %v788_v0, 8.507059e+37  ;;  %v791_v16 = vor.u32 1.1754944e-38, %v790_v3 }
 0x2df   :  { %v738_v42 = vadd.f32 %v1719_v24, %v737_v35  ;;  %v1723_v45 = vpop.eup %1722 }
 0x2e0   :  { %v648_v47 = vadd.f32 %v1721_v4, %v647_v61  ;;  %v690_v48 = vmul.f32 %v1723_v45, %v2078_v28  ;;  %v2097_v49 = vpop.xlane.xlu1 %621  ;;  %v1725_v51 = vpop.eup %1724  ;;  %vm695_vm6 = vweird.f32 %v1723_v45 }
 0x2e1   :  { %v742_v23 = vsel %vm2088_vm15, %v1719_v24, %v738_v42  ;;  %v2099_v50 = vpop.xlane.xlu2 %639  ;;  %1726 = vrcp.f32 %v2097_v49  ;;  %v780_v37 = vmul.f32 %v1725_v51, %v2080_v30  ;;  %vm785_vm8 = vweird.f32 %v1725_v51  ;;  %vm696_vm9 = vmor %vm694_vm7, %vm695_vm6 }
 0x2e2   :  { %v652_v54 = vsel %vm651_vm2, %v1721_v4, %v648_v47  ;;  %v747_v56 = vsel %vm744_vm3, %v746_v15, %v742_v23  ;;  %v691_v58 = vsub.f32 1.0, %v690_v48  ;;  %1728 = vrcp.f32 %v2099_v50  ;;  %vm786_vm12 = vmor %vm784_vm10, %vm785_vm8 }
 0x2e3   :  { %v657_v57 = vsel %vm654_vm5, %v656_v55, %v652_v54  ;;  %v781_v36 = vsub.f32 1.0, %v780_v37  ;;  %v748_v7 = vmul.f32 %v2022_v63, %v747_v56  ;;  %v713_v27 = vand.u32 2147483647, %v2097_v49 }
 0x2e4   :  { %v692_v60 = vmul.f32 %v1723_v45, %v691_v58  ;;  %v658_v6 = vmul.f32 %v2026_v1, %v657_v57  ;;  %v715_v28 = vand.u32 2147483648, %v2097_v49  ;;  %vm709_vm15 = vweird.f32 %v2097_v49 }
 0x2e5   :  { %v782_v8 = vmul.f32 %v1725_v51, %v781_v36  ;;  %1638 = vmatmul.msk.f32.vlgmr.msra.gmra.mxu3 %vm535_vm4, %v748_v7  ;;  %v803_v20 = vand.u32 2147483647, %v2099_v50  ;;  %vm799_vm3 = vweird.f32 %v2099_v50  ;;  %vm714_vm5 = vcmp.eq.f32.partialorder %v713_v27, 8.507059e+37  ;;  %v850_v27 = vld [vmem:[%s2408_s3 + $0xd0] sm:$0xff] }
 0x2e6   :  { %v693_v53 = vadd.f32 %v1723_v45, %v692_v60  ;;  %1632 = vmatmul.msk.f32.vlgmr.msrb.gmra.mxu1 %vm535_vm4, %v658_v6  ;;  %v716_v38 = vor.u32 1.1754944e-38, %v715_v28  ;;  %v825_v28 = vld [vmem:[%s2408_s3 + $0x8] sm:$0xff] }
 0x2e7   :  { %v1727_v9 = vpop.eup %1726  ;;  %v783_v52 = vadd.f32 %v1725_v51, %v782_v8  ;;  %1098 = vmatpush.msrb.mxu1 %v1855_v17  ;;  %vm804_vm7 = vcmp.eq.f32.partialorder %v803_v20, 8.507059e+37  ;;  %v856_v20 = vld [vmem:[%s2408_s3 + $0x100] sm:$0xff] }
 0x2e8   :  { %v697_v11 = vsel %vm696_vm9, %v1723_v45, %v693_v53  ;;  %v705_v1 = vmul.f32 %v1727_v9, %v2097_v49  ;;  %v2116_v63 = vpop.xlane.xlu1 %630  ;;  %v1729_v22 = vpop.eup %1728  ;;  %vm710_vm14 = vweird.f32 %v1727_v9 }
 0x2e9   :  { %v702_v14 = vsel %vm699_vm11, %v701_v2, %v697_v11  ;;  %1730 = vrcp.f32 %v2116_v63  ;;  %v2120_v18 = vpop.xlane.xlu2 %633  ;;  %v787_v24 = vsel %vm786_vm12, %v1725_v51, %v783_v52  ;;  %v795_v43 = vmul.f32 %v1729_v22, %v2099_v50  ;;  %vm711_vm2 = vmor %vm709_vm15, %vm710_vm14 }
 0x2ea   :  { %v703_v5 = vmul.f32 %v2036_v12, %v702_v14  ;;  %v706_v4 = vsub.f32 1.0, %v705_v1  ;;  %v792_v17 = vsel %vm789_vm13, %v791_v16, %v787_v24  ;;  %1732 = vrcp.f32 %v2120_v18  ;;  %v831_v14 = vld [vmem:[%s2408_s3 + $0x38] sm:$0xff]  ;;  %v830_v16 = vld [vmem:[%s2408_s3 + $0x30] sm:$0xff] }
 0x2eb   :  { %v796_v41 = vsub.f32 1.0, %v795_v43  ;;  %v805_v12 = vand.u32 2147483648, %v2099_v50  ;;  %v793_v31 = vmul.f32 %v2034_v10, %v792_v17  ;;  %vm800_vm1 = vweird.f32 %v1729_v22  ;;  %v834_v24 = vld [vmem:[%s2408_s3 + $0x50] sm:$0xff]  ;;  %v827_v43 = vld [vmem:[%s2408_s3 + $0x18] sm:$0xff] }
 0x2ec   :  { %v707_v30 = vmul.f32 %v1727_v9, %v706_v4  ;;  %1635 = vmatmul.msk.f32.vlgmr.msra.gmra.mxu0 %vm535_vm4, %v703_v5  ;;  %vm801_vm6 = vmor %vm799_vm3, %vm800_vm1  ;;  %v760_v15 = vand.u32 2147483648, %v2116_v63  ;;  %v758_v49 = vand.u32 2147483647, %v2116_v63  ;;  %vm754_vm9 = vweird.f32 %v2116_v63  ;;  %v829_v5 = vld [vmem:[%s2408_s3 + $0x28] sm:$0xff]  ;;  %v852_v4 = vld [vmem:[%s2408_s3 + $0xe0] sm:$0xff] }
 0x2ed   :  { %1167 = vmatpush.msra.mxu0 %v288_v26  ;;  %v797_v34 = vmul.f32 %v1729_v22, %v796_v41  ;;  %1641 = vmatmul.msk.f32.vlgmr.msrb.gmra.mxu2 %vm535_vm4, %v793_v31  ;;  %v806_v42 = vor.u32 1.1754944e-38, %v805_v12  ;;  %v775_v56 = vand.u32 2147483648, %v2120_v18  ;;  %v773_v37 = vand.u32 2147483647, %v2120_v18  ;;  %v851_v26 = vld [vmem:[%s2408_s3 + $0xd8] sm:$0xff]  ;;  %v826_v17 = vld [vmem:[%s2408_s3 + $0x10] sm:$0xff] }
 0x2ee   :  { %v708_v32 = vadd.f32 %v1727_v9, %v707_v30  ;;  %v761_v57 = vor.u32 1.1754944e-38, %v760_v15  ;;  %vm759_vm12 = vcmp.eq.f32.partialorder %v758_v49, 8.507059e+37  ;;  %vm769_vm13 = vweird.f32 %v2120_v18  ;;  %v849_v30 = vld [vmem:[%s2408_s3 + $0xc8] sm:$0xff]  ;;  %v824_v41 = vld [vmem:[%s2408_s3] sm:$0xff]  ;;  %v847_v15 = vld [vmem:[%s2408_s3 + $0xb8] sm:$0xff] }
 0x2ef   :  { %v1731_v35 = vpop.eup %1730  ;;  %v798_v61 = vadd.f32 %v1729_v22, %v797_v34  ;;  %v776_v36 = vor.u32 1.1754944e-38, %v775_v56  ;;  %vm774_vm15 = vcmp.eq.f32.partialorder %v773_v37, 8.507059e+37  ;;  %v857_v12 = vld [vmem:[%s2408_s3 + $0x108] sm:$0xff]  ;;  %v842_v34 = vld [vmem:[%s2408_s3 + $0x90] sm:$0xff]  ;;  %v1679_v49 = vld [vmem:[%s2408_s3 + $0x20] ss:$0 sm:$0xff] }
 0x2f0   :  { %v712_v39 = vsel %vm711_vm2, %v1727_v9, %v708_v32  ;;  %v750_v62 = vmul.f32 %v1731_v35, %v2116_v63  ;;  %v643_v40 = vpop.xlane.xlu1 %642  ;;  %v1733_v44 = vpop.eup %1732  ;;  %vm755_vm8 = vweird.f32 %v1731_v35  ;;  %v1676_v31 = vld [vmem:[%s2408_s3 + $0x48] ss:$0 sm:$0xff]  ;;  %v1677_v32 = vld [vmem:[%s2408_s3 + $0x70] ss:$0 sm:$0xff] }
 0x2f1   :  { %v717_v10 = vsel %vm714_vm5, %v716_v38, %v712_v39  ;;  %1734 = vrcp.f32 %v643_v40  ;;  %v802_v45 = vsel %vm801_vm6, %v1729_v22, %v798_v61  ;;  %v765_v55 = vmul.f32 %v1733_v44, %v2120_v18  ;;  %vm756_vm10 = vmor %vm754_vm9, %vm755_vm8  ;;  %v832_v22 = vld [vmem:[%s2408_s3 + $0x40] sm:$0xff]  ;;  %v835_v18 = vld [vmem:[%s2408_s3 + $0x58] sm:$0xff] }
 0x2f2   :  { %v751_v46 = vsub.f32 1.0, %v750_v62  ;;  %v718_v47 = vmul.f32 %v2046_v25, %v717_v10  ;;  %v807_v23 = vsel %vm804_vm7, %v806_v42, %v802_v45  ;;  %vm770_vm11 = vweird.f32 %v1733_v44  ;;  %1291 = vmatpush.msra.mxu2 %v832_v22  ;;  %v841_v38 = vld [vmem:[%s2408_s3 + $0x88] sm:$0xff]  ;;  %v855_v39 = vld [vmem:[%s2408_s3 + $0xf8] sm:$0xff]  ;;  %v840_v10 = vld [vmem:[%s2408_s3 + $0x80] sm:$0xff] }
 0x2f3   :  { %v808_v50 = vmul.f32 %v2044_v19, %v807_v23  ;;  %v766_v51 = vsub.f32 1.0, %v765_v55  ;;  %vm771_vm14 = vmor %vm769_vm13, %vm770_vm11  ;;  %v820_v7 = vand.u32 2147483648, %v643_v40  ;;  %v818_v9 = vand.u32 2147483647, %v643_v40  ;;  %v854_v42 = vld [vmem:[%s2408_s3 + $0xf0] sm:$0xff]  ;;  %v876_v22 = vld [vmem:[%s2408_s3 + $0x1a0] sm:$0xff] }
 0x2f4   :  { %v752_v48 = vmul.f32 %v1731_v35, %v751_v46  ;;  %1636 = vmatmul.msk.f32.vlgmr.msra.gmra.mxu1 %vm535_vm4, %v718_v47  ;;  %vm814_vm2 = vweird.f32 %v643_v40  ;;  %1292 = vmatpush.msra.mxu2 %v831_v14  ;;  %v839_v47 = vld [vmem:[%s2408_s3 + $0x78] sm:$0xff]  ;;  %v1678_v55 = vld [vmem:[%s2408_s3 + $0xe8] ss:$0 sm:$0xff] }
 0x2f5   :  { %1642 = vmatmul.msk.f32.vlgmr.msrb.gmra.mxu3 %vm535_vm4, %v808_v50  ;;  %v767_v58 = vmul.f32 %v1733_v44, %v766_v51  ;;  %v821_v52 = vor.u32 1.1754944e-38, %v820_v7  ;;  %vm819_vm5 = vcmp.eq.f32.partialorder %v818_v9, 8.507059e+37  ;;  %1268 = vmatpush.msra.mxu1 %v827_v43  ;;  %v845_v51 = vld [vmem:[%s2408_s3 + $0xa8] sm:$0xff]  ;;  %v872_v7 = vld [vmem:[%s2408_s3 + $0x180] sm:$0xff] }
 0x2f6   :  { %v753_v54 = vadd.f32 %v1731_v35, %v752_v48  ;;  %1293 = vmatpush.msra.mxu2 %v830_v16  ;;  %v846_v48 = vld [vmem:[%s2408_s3 + $0xb0] sm:$0xff]  ;;  %v861_v9 = vld [vmem:[%s2408_s3 + $0x128] sm:$0xff] }
 0x2f7   :  { %v1735_v25 = vpop.eup %1734  ;;  %v768_v19 = vadd.f32 %v1733_v44, %v767_v58  ;;  %1269 = vmatpush.msra.mxu1 %v826_v17  ;;  %v874_v17 = vld [vmem:[%s2408_s3 + $0x190] sm:$0xff] }
 0x2f8   :  { %v757_v59 = vsel %vm756_vm10, %v1731_v35, %v753_v54  ;;  %v810_v60 = vmul.f32 %v1735_v25, %v643_v40  ;;  %vm815_vm1 = vweird.f32 %v1735_v25  ;;  %1294 = vmatpush.msra.mxu2 %v829_v5  ;;  %v859_v5 = vld [vmem:[%s2408_s3 + $0x118] sm:$0xff] }
 0x2f9   :  { %v762_v21 = vsel %vm759_vm12, %v761_v57, %v757_v59  ;;  %v772_v6 = vsel %vm771_vm14, %v1733_v44, %v768_v19  ;;  %vm816_vm3 = vmor %vm814_vm2, %vm815_vm1  ;;  %1270 = vmatpush.msra.mxu1 %v825_v28  ;;  %v1680_v59 = vld [vmem:[%s2408_s3 + $0x110] ss:$0 sm:$0xff]  ;;  %v1681_v19 = vld [vmem:[%s2408_s3 + $0x98] ss:$0 sm:$0xff] }
 0x2fa   :  { %v811_v0 = vsub.f32 1.0, %v810_v60  ;;  %v763_v3 = vmul.f32 %v2055_v13, %v762_v21  ;;  %v777_v53 = vsel %vm774_vm15, %v776_v36, %v772_v6  ;;  %1383 = vmatpush.msrb.mxu2 %v852_v4  ;;  %v862_v36 = vld [vmem:[%s2408_s3 + $0x130] sm:$0xff]  ;;  %v869_v4 = vld [vmem:[%s2408_s3 + $0x168] sm:$0xff] }
 0x2fb   :  { %v778_v2 = vmul.f32 %v2053_v29, %v777_v53  ;;  %v837_v29 = vld [vmem:[%s2408_s3 + $0x68] sm:$0xff]  ;;  %1271 = vmatpush.msra.mxu1 %v824_v41 }
 0x2fc   :  { %v812_v8 = vmul.f32 %v1735_v25, %v811_v0  ;;  %1639 = vmatmul.msk.f32.vlgmr.msrb.gmra.mxu0 %vm535_vm4, %v763_v3  ;;  %1314 = vmatpush.msra.mxu3 %v837_v29  ;;  %v860_v29 = vld [vmem:[%s2408_s3 + $0x120] sm:$0xff] }
 0x2fd   :  { %1640 = vmatmul.msk.f32.vlgmr.msrb.gmra.mxu1 %vm535_vm4, %v778_v2  ;;  %1384 = vmatpush.msrb.mxu2 %v851_v26  ;;  %v1683_v26 = vld [vmem:[%s2408_s3 + $0xc0] ss:$0 sm:$0xff] }
 0x2fe   :  { %v813_v11 = vadd.f32 %v1735_v25, %v812_v8  ;;  %1337 = vmatpush.msrb.mxu0 %v842_v34  ;;  %1360 = vmatpush.msrb.mxu1 %v847_v15  ;;  %v877_v8 = vld [vmem:[%s2408_s3 + $0x1a8] sm:$0xff] }
 0x2ff   :  { %1385 = vmatpush.msrb.mxu2 %v850_v27 }
 0x300   :  { %v817_v1 = vsel %vm816_vm3, %v1735_v25, %v813_v11  ;;  %1338 = vmatpush.msrb.mxu0 %v841_v38  ;;  %1361 = vmatpush.msrb.mxu1 %v846_v48  ;;  %v844_v25 = vld [vmem:[%s2408_s3 + $0xa0] sm:$0xff] }
 0x301   :  { %v822_v13 = vsel %vm819_vm5, %v821_v52, %v817_v1  ;;  %1386 = vmatpush.msrb.mxu2 %v849_v30  ;;  %v871_v1 = vld [vmem:[%s2408_s3 + $0x178] sm:$0xff]  ;;  %v1682_v30 = vld [vmem:[%s2408_s3 + $0x188] ss:$0 sm:$0xff] }
 0x302   :  { %v823_v63 = vmul.f32 %v2061_v33, %v822_v13  ;;  %v836_v33 = vld [vmem:[%s2408_s3 + $0x60] sm:$0xff]  ;;  %1339 = vmatpush.msrb.mxu0 %v840_v10  ;;  %1362 = vmatpush.msrb.mxu1 %v845_v51  ;;  %v866_v10 = vld [vmem:[%s2408_s3 + $0x150] sm:$0xff] }
 0x303   :  { %1315 = vmatpush.msra.mxu3 %v836_v33  ;;  %v870_v33 = vld [vmem:[%s2408_s3 + $0x170] sm:$0xff] }
 0x304   :  { %1643 = vmatmul.msk.f32.vlgmr.msra.gmra.mxu0 %vm535_vm4, %v823_v63  ;;  %1363 = vmatpush.msrb.mxu1 %v844_v25  ;;  %vm1252_vm4 = vcmask 261120   ;;  %v864_v25 = vld [vmem:[%s2408_s3 + $0x140] sm:$0xff] }
 0x305   :  { %1316 = vmatpush.msra.mxu3 %v835_v18  ;;  %1340 = vmatpush.msrb.mxu0 %v839_v47  ;;  %v875_v18 = vld [vmem:[%s2408_s3 + $0x198] sm:$0xff] }
 0x307   :  { %1317 = vmatpush.msra.mxu3 %v834_v24  ;;  %1429 = vmatpush.msra.mxu0 %v862_v36  ;;  %v880_v36 = vld [vmem:[%s2408_s3 + $0x1c0] sm:$0xff] }
 0x309   :  { %1406 = vmatpush.msrb.mxu3 %v857_v12  ;;  %1430 = vmatpush.msra.mxu0 %v861_v9 }
 0x30b   :  { %1407 = vmatpush.msrb.mxu3 %v856_v20  ;;  %1431 = vmatpush.msra.mxu0 %v860_v29 }
 0x30d   :  { %1408 = vmatpush.msrb.mxu3 %v855_v39  ;;  %1432 = vmatpush.msra.mxu0 %v859_v5  ;;  %v867_v39 = vld [vmem:[%s2408_s3 + $0x158] sm:$0xff] }
 0x30f   :  { %1409 = vmatpush.msrb.mxu3 %v854_v42 }
 0x357   :  { %v962_v62 = vpop.f32.mrf.mxu3 }
 0x358   :  { %v939_v35 = vpop.f32.mrf.mxu2  ;;  %v963_v40 = vadd.f32 %v1677_v32, %v962_v62 }
 0x359   :  { %v940_v61 = vadd.f32 %v1676_v31, %v939_v35 }
 0x35a   :  { %v1186_v45 = vmin.f32 %v963_v40, 0.0  ;;  %vm1174_vm7 = vcmp.gt.f32.partialorder %v963_v40, 0.0 }
 0x35b   :  { %v1185_v44 = vmin.f32 %v940_v61, 0.0  ;;  %vm1173_vm6 = vcmp.gt.f32.partialorder %v940_v61, 0.0 }
 0x35c   :  { %v1200_v23 = vmul.f32 1.442695, %v1186_v45  ;;  %v1684_v45 = vld [vmem:[%s2408_s3 + $0x1b0] ss:$0 sm:$0xff] }
 0x35d   :  { %v1198_v46 = vmul.f32 1.442695, %v1185_v44 }
 0x35f   :  { %1736 = vpow2.f32 %v1198_v46  ;;  %v1685_v46 = vld [vmem:[%s2408_s3 + $0x138] ss:$0 sm:$0xff] }
 0x360   :  { %1738 = vpow2.f32 %v1200_v23  ;;  %v1031_v50 = vpop.f32.mrf.mxu2 }
 0x361   :  { %v2245_v54 = vadd.f32 %v1678_v55, %v1031_v50  ;;  %v865_v55 = vld [vmem:[%s2408_s3 + $0x148] sm:$0xff] }
 0x363   :  { %v916_v56 = vpop.f32.mrf.mxu1  ;;  %v1189_v58 = vmin.f32 %v2245_v54, 0.0  ;;  %vm1177_vm8 = vcmp.gt.f32.partialorder %v2245_v54, 0.0 }
 0x364   :  { %v2251_v37 = vadd.f32 %v1679_v49, %v916_v56  ;;  %v882_v49 = vld [vmem:[%s2408_s3 + $0x1d0] sm:$0xff]  ;;  %v1686_v56 = vld [vmem:[%s2408_s3 + $0x160] ss:$0 sm:$0xff] }
 0x365   :  { %v1737_v57 = vpop.eup %1736  ;;  %v1206_v3 = vmul.f32 1.442695, %v1189_v58 }
 0x366   :  { %v1739_v60 = vpop.eup %1738  ;;  %v1645_v21 = vadd.f32 -1.0, %v1737_v57  ;;  %v1184_v6 = vmin.f32 %v2251_v37, 0.0  ;;  %vm1172_vm9 = vcmp.gt.f32.partialorder %v2251_v37, 0.0 }
 0x367   :  { %v1646_v0 = vadd.f32 -1.0, %v1739_v60  ;;  %1740 = vpow2.f32 %v1206_v3  ;;  %v1687_v3 = vld [vmem:[%s2408_s3 + $0x1d8] ss:$0 sm:$0xff] }
 0x368   :  { %v1233_v53 = vsel %vm1173_vm6, %v940_v61, %v1645_v21  ;;  %v1196_v11 = vmul.f32 1.442695, %v1184_v6  ;;  %v1054_v13 = vpop.f32.mrf.mxu3 }
 0x369   :  { %v1234_v2 = vsel %vm1174_vm7, %v963_v40, %v1646_v0  ;;  %1657 = vmatmul.msk.f32.vlgmr.msra.gmra.mxu2 %vm1252_vm4, %v1233_v53  ;;  %v985_v52 = vpop.f32.mrf.mxu0  ;;  %v2283_v14 = vadd.f32 %v1680_v59, %v1054_v13  ;;  %v881_v59 = vld [vmem:[%s2408_s3 + $0x1c8] sm:$0xff] }
 0x36a   :  { %1658 = vmatmul.msk.f32.vlgmr.msra.gmra.mxu3 %vm1252_vm4, %v1234_v2  ;;  %v986_v63 = vadd.f32 %v1681_v19, %v985_v52  ;;  %1475 = vmatpush.msra.mxu2 %v872_v7  ;;  %1742 = vpow2.f32 %v1196_v11 }
 0x36b   :  { %1498 = vmatpush.msra.mxu3 %v877_v8  ;;  %v1190_v24 = vmin.f32 %v2283_v14, 0.0  ;;  %vm1178_vm11 = vcmp.gt.f32.partialorder %v2283_v14, 0.0  ;;  %v879_v8 = vld [vmem:[%s2408_s3 + $0x1b8] sm:$0xff] }
 0x36c   :  { %v1187_v16 = vmin.f32 %v986_v63, 0.0  ;;  %1476 = vmatpush.msra.mxu2 %v871_v1  ;;  %vm1175_vm10 = vcmp.gt.f32.partialorder %v986_v63, 0.0 }
 0x36d   :  { %1499 = vmatpush.msra.mxu3 %v876_v22  ;;  %v1741_v27 = vpop.eup %1740  ;;  %v1208_v28 = vmul.f32 1.442695, %v1190_v24 }
 0x36e   :  { %v1202_v43 = vmul.f32 1.442695, %v1187_v16  ;;  %1477 = vmatpush.msra.mxu2 %v870_v33  ;;  %v1649_v41 = vadd.f32 -1.0, %v1741_v27 }
 0x36f   :  { %1500 = vmatpush.msra.mxu3 %v875_v18 }
 0x370   :  { %1744 = vpow2.f32 %v1202_v43  ;;  %1478 = vmatpush.msra.mxu2 %v869_v4  ;;  %v1743_v12 = vpop.eup %1742  ;;  %v1237_v32 = vsel %vm1177_vm8, %v2245_v54, %v1649_v41  ;;  %v1123_v20 = vpop.f32.mrf.mxu2 }
 0x371   :  { %1746 = vpow2.f32 %v1208_v28  ;;  %v1008_v31 = vpop.f32.mrf.mxu1  ;;  %1501 = vmatpush.msra.mxu3 %v874_v17  ;;  %v1644_v34 = vadd.f32 -1.0, %v1743_v12  ;;  %v2310_v38 = vadd.f32 %v1682_v30, %v1123_v20  ;;  %1661 = vmatmul.msk.f32.vlgmr.msrb.gmra.mxu2 %vm1252_vm4, %v1237_v32 }
 0x372   :  { %v1009_v35 = vadd.f32 %v1683_v26, %v1008_v31 }
 0x373   :  { %v1232_v61 = vsel %vm1172_vm9, %v2251_v37, %v1644_v34  ;;  %v1193_v40 = vmin.f32 %v2310_v38, 0.0  ;;  %vm1181_vm13 = vcmp.gt.f32.partialorder %v2310_v38, 0.0 }
 0x374   :  { %v1188_v62 = vmin.f32 %v1009_v35, 0.0  ;;  %1656 = vmatmul.msk.f32.vlgmr.msra.gmra.mxu1 %vm1252_vm4, %v1232_v61  ;;  %vm1176_vm12 = vcmp.gt.f32.partialorder %v1009_v35, 0.0  ;;  %v1246_v61 = vld [vmem:[%s2409_s4 + $0x10] sm:$0xff] }
 0x375   :  { %1452 = vmatpush.msra.mxu1 %v867_v39  ;;  %v1214_v15 = vmul.f32 1.442695, %v1193_v40  ;;  %v1247_v39 = vld [vmem:[%s2409_s4 + $0x18] sm:$0xff] }
 0x376   :  { %v1745_v42 = vpop.eup %1744  ;;  %v1204_v44 = vmul.f32 1.442695, %v1188_v62 }
 0x377   :  { %v1747_v47 = vpop.eup %1746  ;;  %v1647_v23 = vadd.f32 -1.0, %v1745_v42  ;;  %1453 = vmatpush.msra.mxu1 %v866_v10  ;;  %v1245_v10 = vld [vmem:[%s2409_s4 + $0x8] sm:$0xff] }
 0x378   :  { %v1650_v48 = vadd.f32 -1.0, %v1747_v47  ;;  %1748 = vpow2.f32 %v1204_v44  ;;  %v1146_v51 = vpop.f32.mrf.mxu3  ;;  %v1244_v44 = vld [vmem:[%s2409_s4] sm:$0xff] }
 0x379   :  { %v1235_v50 = vsel %vm1175_vm10, %v986_v63, %v1647_v23  ;;  %1750 = vpow2.f32 %v1214_v15  ;;  %v1077_v54 = vpop.f32.mrf.mxu0  ;;  %v1147_v58 = vadd.f32 %v1684_v45, %v1146_v51  ;;  %1454 = vmatpush.msra.mxu1 %v865_v55 }
 0x37a   :  { %v1238_v57 = vsel %vm1178_vm11, %v2283_v14, %v1650_v48  ;;  %v1078_v37 = vadd.f32 %v1685_v46, %v1077_v54  ;;  %1659 = vmatmul.msk.f32.vlgmr.msrb.gmra.mxu0 %vm1252_vm4, %v1235_v50  ;;  %v1100_v19 = vpop.f32.mrf.mxu1 }
 0x37b   :  { %1662 = vmatmul.msk.f32.vlgmr.msrb.gmra.mxu3 %vm1252_vm4, %v1238_v57  ;;  %1521 = vmatpush.msrb.mxu0 %v882_v49  ;;  %v1194_v60 = vmin.f32 %v1147_v58, 0.0  ;;  %v1101_v0 = vadd.f32 %v1686_v56, %v1100_v19  ;;  %vm1182_vm14 = vcmp.gt.f32.partialorder %v1147_v58, 0.0  ;;  %v1248_v19 = vld [vmem:[%s2409_s4 + $0x20] sm:$0xff] }
 0x37c   :  { %v1191_v21 = vmin.f32 %v1078_v37, 0.0  ;;  %1455 = vmatpush.msra.mxu1 %v864_v25  ;;  %vm1179_vm15 = vcmp.gt.f32.partialorder %v1078_v37, 0.0 }
 0x37d   :  { %1522 = vmatpush.msrb.mxu0 %v881_v59  ;;  %v1216_v7 = vmul.f32 1.442695, %v1194_v60  ;;  %v1192_v11 = vmin.f32 %v1101_v0, 0.0  ;;  %vm1180_vm1 = vcmp.gt.f32.partialorder %v1101_v0, 0.0 }
 0x37e   :  { %v1749_v6 = vpop.eup %1748  ;;  %v1210_v53 = vmul.f32 1.442695, %v1191_v21 }
 0x37f   :  { %v1751_v9 = vpop.eup %1750  ;;  %v1648_v2 = vadd.f32 -1.0, %v1749_v6  ;;  %1523 = vmatpush.msrb.mxu0 %v880_v36  ;;  %1752 = vpow2.f32 %v1216_v7  ;;  %v1212_v13 = vmul.f32 1.442695, %v1192_v11  ;;  %v1552_v7 = vperm.slane %v1248_v19, 0 }
 0x380   :  { %v1653_v52 = vadd.f32 -1.0, %v1751_v9  ;;  %1754 = vpow2.f32 %v1210_v53 }
 0x381   :  { %v1236_v1 = vsel %vm1176_vm12, %v1009_v35, %v1648_v2  ;;  %v1169_v63 = vpop.f32.mrf.mxu0  ;;  %1524 = vmatpush.msrb.mxu0 %v879_v8  ;;  %1756 = vpow2.f32 %v1212_v13 }
 0x382   :  { %v1241_v22 = vsel %vm1181_vm13, %v2310_v38, %v1653_v52  ;;  %v1170_v29 = vadd.f32 %v1687_v3, %v1169_v63  ;;  %1660 = vmatmul.msk.f32.vlgmr.msrb.gmra.mxu1 %vm1252_vm4, %v1236_v1  ;;  %v1250_v63 = vld [vmem:[%s2409_s4 + $0x30] sm:$0xff] }
 0x383   :  { %1665 = vmatmul.msk.f32.vlgmr.msra.gmra.mxu2 %vm1252_vm4, %v1241_v22  ;;  %1576 = vmatpush.msrb.mxu1 %v1247_v39  ;;  %v1249_v22 = vld [vmem:[%s2409_s4 + $0x28] sm:$0xff] }
 0x384   :  { %v1195_v14 = vmin.f32 %v1170_v29, 0.0  ;;  %vm1183_vm2 = vcmp.gt.f32.partialorder %v1170_v29, 0.0  ;;  %1608 = vmatpush.msrb.mxu2 %v1250_v63 }
 0x385   :  { %v1753_v33 = vpop.eup %1752  ;;  %1577 = vmatpush.msrb.mxu1 %v1246_v61 }
 0x386   :  { %v1218_v16 = vmul.f32 1.442695, %v1195_v14  ;;  %v1755_v18 = vpop.eup %1754  ;;  %v1654_v5 = vadd.f32 -1.0, %v1753_v33  ;;  %1609 = vmatpush.msrb.mxu2 %v1249_v22 }
 0x387   :  { %v1651_v24 = vadd.f32 -1.0, %v1755_v18  ;;  %v1757_v4 = vpop.eup %1756  ;;  %1578 = vmatpush.msrb.mxu1 %v1245_v10 }
 0x388   :  { %1758 = vpow2.f32 %v1218_v16  ;;  %v1242_v43 = vsel %vm1182_vm14, %v1147_v58, %v1654_v5  ;;  %v1652_v17 = vadd.f32 -1.0, %v1757_v4 }
 0x389   :  { %v1239_v26 = vsel %vm1179_vm15, %v1078_v37, %v1651_v24  ;;  %1666 = vmatmul.msk.f32.vlgmr.msra.gmra.mxu3 %vm1252_vm4, %v1242_v43  ;;  %1579 = vmatpush.msrb.mxu1 %v1244_v44  ;;  %v1251_v43 = vld [vmem:[%s2409_s4 + $0x38] sm:$0xff] }
 0x38a   :  { %1663 = vmatmul.msk.f32.vlgmr.msra.gmra.mxu0 %vm1252_vm4, %v1239_v26  ;;  %v1240_v27 = vsel %vm1180_vm1, %v1101_v0, %v1652_v17  ;;  %v1590_v26 = vperm.slane %v1251_v43, 0 }
 0x38b   :  { %1664 = vmatmul.msk.f32.vlgmr.msra.gmra.mxu1 %vm1252_vm4, %v1240_v27 }
 0x38e   :  { %v1759_v28 = vpop.eup %1758 }
 0x38f   :  { %v1655_v30 = vadd.f32 -1.0, %v1759_v28 }
 0x391   :  { %v1243_v41 = vsel %vm1183_vm2, %v1170_v29, %v1655_v30  ;;  %v1560_v29 = vperm.slane %v1248_v19, 1 }
 0x392   :  { %1667 = vmatmul.msk.f32.vlgmr.msrb.gmra.mxu0 %vm1252_vm4, %v1243_v41 }
 0x3ec   :  { %v1296_v31 = vpop.f32.mrf.mxu2 }
 0x3ed   :  { %v1530_v34 = vsel %vm1252_vm4, %v1296_v31, 0.0  ;;  %v1319_v20 = vpop.f32.mrf.mxu3 }
 0x3ee   :  { %v1532_v62 = vsel %vm1252_vm4, %v1319_v20, 0.0 }
 0x3f1   :  { %v1273_v12 = vpop.f32.mrf.mxu1 }
 0x3f2   :  { %v1529_v32 = vsel %vm1252_vm4, %v1273_v12, 0.0 }
 0x3f3   :  { %v1531_v35 = vadd.f32 %v1530_v34, %v1529_v32 }
 0x3f4   :  { %v1388_v47 = vpop.f32.mrf.mxu2 }
 0x3f5   :  { %v1533_v42 = vadd.f32 %v1532_v62, %v1531_v35  ;;  %v1538_v55 = vsel %vm1252_vm4, %v1388_v47, 0.0 }
 0x3f7   :  { %v1342_v38 = vpop.f32.mrf.mxu0 }
 0x3f8   :  { %v1534_v40 = vsel %vm1252_vm4, %v1342_v38, 0.0 }
 0x3f9   :  { %v1535_v45 = vadd.f32 %v1534_v40, %v1533_v42 }
 0x3fe   :  { %v1411_v48 = vpop.f32.mrf.mxu3 }
 0x3ff   :  { %v1365_v46 = vpop.f32.mrf.mxu1  ;;  %v1540_v50 = vsel %vm1252_vm4, %v1411_v48, 0.0 }
 0x400   :  { %v1536_v23 = vsel %vm1252_vm4, %v1365_v46, 0.0 }
 0x401   :  { %v1537_v15 = vadd.f32 %v1536_v23, %v1535_v45 }
 0x403   :  { %v1539_v49 = vadd.f32 %v1538_v55, %v1537_v15 }
 0x405   :  { %v1541_v54 = vadd.f32 %v1540_v50, %v1539_v49 }
 0x406   :  { %v1480_v25 = vpop.f32.mrf.mxu2 }
 0x407   :  { %v1434_v51 = vpop.f32.mrf.mxu0  ;;  %v1546_v60 = vsel %vm1252_vm4, %v1480_v25, 0.0 }
 0x408   :  { %v1542_v56 = vsel %vm1252_vm4, %v1434_v51, 0.0  ;;  %v1457_v58 = vpop.f32.mrf.mxu1 }
 0x409   :  { %v1543_v57 = vadd.f32 %v1542_v56, %v1541_v54  ;;  %v1544_v37 = vsel %vm1252_vm4, %v1457_v58, 0.0 }
 0x40b   :  { %v1545_v59 = vadd.f32 %v1544_v37, %v1543_v57 }
 0x40c   :  { %v1503_v21 = vpop.f32.mrf.mxu3 }
 0x40d   :  { %v1547_v36 = vadd.f32 %v1546_v60, %v1545_v59  ;;  %v1548_v0 = vsel %vm1252_vm4, %v1503_v21, 0.0 }
 0x40f   :  { %v1549_v3 = vadd.f32 %v1548_v0, %v1547_v36  ;;  %v1526_v6 = vpop.f32.mrf.mxu0 }
 0x410   :  { %v1550_v53 = vsel %vm1252_vm4, %v1526_v6, 0.0 }
 0x411   :  { %v1551_v8 = vadd.f32 %v1550_v53, %v1549_v3 }
 0x413   :  { %v1553_v9 = vadd.f32 %v1552_v7, %v1551_v8 }
 0x415   :  { %v1555_v2 = vmin.f32 %v1553_v9, 0.0  ;;  %vm1554_vm3 = vcmp.gt.f32.partialorder %v1553_v9, 0.0 }
 0x417   :  { %v1556_v11 = vmul.f32 1.442695, %v1555_v2 }
 0x419   :  { %1760 = vpow2.f32 %v1556_v11 }
 0x41f   :  { %v1761_v52 = vpop.eup %1760 }
 0x420   :  { %v1668_v1 = vadd.f32 -1.0, %v1761_v52 }
 0x422   :  { %v1559_v13 = vsel %vm1554_vm3, %v1553_v9, %v1668_v1 }
 0x423   :  { %1669 = vmatmul.msk.f32.vlgmr.msrb.gmra.mxu1 %vm1252_vm4, %v1559_v13 }
 0x4a0   :  { %v1581_v14 = vpop.f32.mrf.mxu1 }
 0x4a1   :  { %v1582_v33 = vadd.f32 %v1581_v14, %v1560_v29 }
 0x4a3   :  { %v1585_v16 = vmin.f32 %v1582_v33, 0.0  ;;  %vm1584_vm5 = vcmp.gt.f32.partialorder %v1582_v33, 0.0 }
 0x4a5   :  { %v1586_v18 = vmul.f32 1.442695, %v1585_v16 }
 0x4a7   :  { %1762 = vpow2.f32 %v1586_v18 }
 0x4ad   :  { %v1763_v5 = vpop.eup %1762 }
 0x4ae   :  { %v1670_v24 = vadd.f32 -1.0, %v1763_v5 }
 0x4b0   :  { %v1589_v4 = vsel %vm1584_vm5, %v1582_v33, %v1670_v24 }
 0x4b1   :  { %1671 = vmatmul.msk.f32.vlgmr.msrb.gmra.mxu2 %vm47_vm0, %v1589_v4 }
 0x534   :  { %v1611_v17 = vpop.f32.mrf.mxu2 }
 0x535   :  { %v1612_v27 = vadd.f32 %v1611_v17, %v1590_v26 }
 0x537   :  { %1614 = vst [vmem:[%s2410_s5] sm:$0xff] %v1612_v27 }

</bundles_post_ra>
